<compile_context>
chip_gen: v6e
topology: v6e:2x2x1
jax: 0.10.0
libtpu: 0.0.40
codegen_flags: <defaults>
</compile_context>

<pallas_src>
from functools import partial

import jax
import jax.numpy as jnp
from jax.experimental import pallas as pl
from jax.experimental.pallas import tpu as pltpu


def _to_dense_kernel(flags_ref, idx_ref, hi_ref, lo_ref, out_ref, *,
                     hwp, n_tiles, n_nchunks):
    """One grid step = (spatial tile j, batch b, point-chunk k).

    flags_ref: [B * n_tiles * n_nchunks] int32 SMEM; #points of chunk k that
               land in tile (b, j).
    idx_ref:   [NCHUNK, 1] int32; sorted global flat index b*HWp + x*W + y,
               sentinel (B*HWp) for padded / out-of-range points.
    hi_ref:    [C, NCHUNK] bf16; hi part of the f32 features (transposed).
    lo_ref:    [C, NCHUNK] bf16; lo (residual) part of the f32 features.
    out_ref:   [1, C, THW] f32 output tile; resident across k (accumulator).
    """
    j = pl.program_id(0)
    b = pl.program_id(1)
    k = pl.program_id(2)
    thw = out_ref.shape[2]

    @pl.when(k == 0)
    def _init():
        out_ref[...] = jnp.zeros_like(out_ref)

    cnt = flags_ref[(b * n_tiles + j) * n_nchunks + k]

    @pl.when(cnt > 0)
    def _compute():
        # Tile-local position of every point of this chunk (O(NCHUNK) work).
        offset = b * hwp + j * thw
        local = idx_ref[...] - offset                               # [Nc, 1] i32

        # (1, THW) iota broadcast against (Nc, 1): compare stays int32, the
        # bool mask is cast to bf16 exactly once (0/1 exact in bf16).
        col = jax.lax.broadcasted_iota(jnp.int32, (1, thw), 1)      # [1, THW]
        onehot = (local == col).astype(jnp.bfloat16)                # [Nc, THW]

        # hi/lo split: two bf16 matmuls accumulated in f32 ~= exact f32 scatter.
        dense = jnp.dot(hi_ref[...], onehot,
                        preferred_element_type=jnp.float32)         # [C, THW]
        dense = dense + jnp.dot(lo_ref[...], onehot,
                                preferred_element_type=jnp.float32)
        out_ref[0] += dense


def _round_up(x, m):
    return ((x + m - 1) // m) * m


def to_dense_mink(coords, feats, *, input_shape, first_shrink_stride,
                  first_upsample_stride, out_size, tile_hw=None, n_chunk=None):
    """JAX/Pallas equivalent of ToDenseMink.forward.

    coords: int32 [N, 3] = (batch_idx, x, y); x/y are multiples of `scale`.
    feats:  float [N, C] with C == out_size.
    Returns [B, out_size, x_size // scale, y_size // scale] (NCHW); duplicate
    coordinates sum (MinkowskiEngine sparse tensors are coalesced upstream).
    """
    batch_size, x_size, y_size, _ = input_shape
    scale = first_shrink_stride // first_upsample_stride
    H = x_size // scale
    W = y_size // scale
    HW = H * W
    N, C = feats.shape
    assert C == out_size
    out_dtype = feats.dtype

    # Edge case: no points -> all zeros (empty blocks would not lower).
    if N == 0:
        return jnp.zeros((batch_size, C, H, W), out_dtype)

    # Spatial tile: multiple of 128 (lane-dense stores), target 512 so each
    # output write is >= 64 KiB; HW is padded up to a multiple of THW.
    if tile_hw is None:
        THW = _round_up(HW, 128) if HW <= 512 else 512
    else:
        THW = int(tile_hw)
    assert THW % 128 == 0
    HWp = _round_up(HW, THW)
    n_tiles = HWp // THW

    # Point chunking along N: bounds per-step VMEM temporaries and lets the
    # sorted-sparsity flags skip empty (tile, chunk) pairs.
    N128 = _round_up(N, 128)
    NCHUNK = int(n_chunk) if n_chunk is not None else min(512, N128)
    assert NCHUNK % 128 == 0
    N_pad = _round_up(N128, NCHUNK)
    n_nchunks = N_pad // NCHUNK

    total_tiles = batch_size * n_tiles
    sentinel = batch_size * HWp          # never matches any local position

    # --- wrapper glue: flat indices, validity, sort, hi/lo split ------------
    b_idx = coords[:, 0].astype(jnp.int32)
    xi = coords[:, 1].astype(jnp.int32) // scale
    yi = coords[:, 2].astype(jnp.int32) // scale
    valid = ((b_idx >= 0) & (b_idx < batch_size) &
             (xi >= 0) & (xi < H) & (yi >= 0) & (yi < W))
    g = jnp.where(valid, b_idx * HWp + xi * W + yi, sentinel).astype(jnp.int32)

    # Sort points by (batch, tile) so each tile's points hit few chunks.
    order = jnp.argsort(g)
    g = g[order]
    f = feats[order].astype(jnp.float32)

    pad = N_pad - N
    g = jnp.pad(g, (0, pad), constant_values=sentinel)
    f = jnp.pad(f, ((0, pad), (0, 0)))

    f_hi = f.astype(jnp.bfloat16)
    f_lo = (f - f_hi.astype(jnp.float32)).astype(jnp.bfloat16)
    hi_t = f_hi.T                                   # [C, N_pad]
    lo_t = f_lo.T                                   # [C, N_pad]
    idx = g.reshape(N_pad, 1)                       # [N_pad, 1]

    # Per-(tile, chunk) point counts -> scalar-prefetched skip flags.
    tile_of_pt = jnp.where(g < sentinel, g // THW, total_tiles)
    chunk_of_pt = jnp.arange(N_pad, dtype=jnp.int32) // NCHUNK
    flags = jnp.zeros((n_nchunks, total_tiles + 1), jnp.int32)
    flags = flags.at[chunk_of_pt, tile_of_pt].add(1)
    flags = flags[:, :total_tiles].T.reshape(-1)    # [(b*n_tiles+j)*n_nchunks+k]

    kernel = partial(_to_dense_kernel, hwp=HWp, n_tiles=n_tiles,
                     n_nchunks=n_nchunks)

    cost = pl.CostEstimate(
        flops=2 * 2 * C * N_pad * HWp,
        transcendentals=0,
        bytes_accessed=batch_size * C * HWp * 4 + N_pad * (4 + 4 * C),
    )

    out = pl.pallas_call(
        kernel,
        out_shape=jax.ShapeDtypeStruct((batch_size, C, HWp), jnp.float32),
        grid_spec=pltpu.PrefetchScalarGridSpec(
            num_scalar_prefetch=1,
            grid=(n_tiles, batch_size, n_nchunks),
            in_specs=[
                pl.BlockSpec((NCHUNK, 1), lambda j, b, k, fl: (k, 0)),
                pl.BlockSpec((C, NCHUNK), lambda j, b, k, fl: (0, k)),
                pl.BlockSpec((C, NCHUNK), lambda j, b, k, fl: (0, k)),
            ],
            out_specs=pl.BlockSpec((1, C, THW), lambda j, b, k, fl: (b, 0, j)),
        ),
        compiler_params=pltpu.CompilerParams(
            dimension_semantics=("parallel", "parallel", "arbitrary"),
            vmem_limit_bytes=32 * 1024 * 1024,
        ),
        cost_estimate=cost,
    )(flags, idx, hi_t, lo_t)

    if HWp != HW:
        out = out[:, :, :HW]
    # [B, C, HW] -> [B, C, H, W]  (free reshape, no transpose)
    return out.reshape(batch_size, C, H, W).astype(out_dtype)


if __name__ == "__main__":
    # Shapes consistent with the module: input_shape = (batch, x, y, _),
    # scale = 2, out_size = 32  ->  dense grid 32 x 32, HW = 1024,
    # THW = 512 (2 spatial tiles), grid = (2, 2, 1).
    batch_size, x_size, y_size = 2, 64, 64
    first_shrink_stride, first_upsample_stride = 2, 1
    out_size = 32
    scale = first_shrink_stride // first_upsample_stride
    H, W = x_size // scale, y_size // scale

    N = 300  # sparse points (chunked/padded inside the wrapper)
    key = jax.random.PRNGKey(0)
    kb, kx, ky, kf = jax.random.split(key, 4)
    coords = jnp.stack(
        [
            jax.random.randint(kb, (N,), 0, batch_size),
            jax.random.randint(kx, (N,), 0, H) * scale,   # strided coords
            jax.random.randint(ky, (N,), 0, W) * scale,
        ],
        axis=1,
    ).astype(jnp.int32)
    feats = jax.random.normal(kf, (N, out_size), dtype=jnp.float32)

    dense = to_dense_mink(
        coords, feats,
        input_shape=(batch_size, x_size, y_size, 0),
        first_shrink_stride=first_shrink_stride,
        first_upsample_stride=first_upsample_stride,
        out_size=out_size,
    )
    dense = jax.block_until_ready(dense)
    assert dense.shape == (batch_size, out_size, H, W)

    # Exact f32 scatter reference.  The kernel's hi/lo bf16 split reproduces
    # the f32 features to ~2^-16 relative error; duplicates sum in both paths.
    ref = jnp.zeros((batch_size, H, W, out_size), jnp.float32)
    ref = ref.at[coords[:, 0], coords[:, 1] // scale,
                 coords[:, 2] // scale].add(feats)
    ref = ref.transpose(0, 3, 1, 2)
    assert jnp.allclose(dense, ref, atol=1e-4, rtol=1e-4), "mismatch vs reference"

    print("KERNEL_OK")
</pallas_src>

<mosaic_0001>
module attributes {stable_mosaic.version = 11 : i64} {
  func.func @_to_dense_kernel(%arg0: i32, %arg1: i32, %arg2: i32, %arg3: memref<4xi32, #tpu.memory_space<smem>>, %arg4: memref<384x1xi32, #tpu.memory_space<vmem>>, %arg5: memref<32x384xbf16, #tpu.memory_space<vmem>>, %arg6: memref<32x384xbf16, #tpu.memory_space<vmem>>, %arg7: memref<1x32x512xf32, #tpu.memory_space<vmem>>) attributes {dimension_semantics = [#tpu.dimension_semantics<parallel>, #tpu.dimension_semantics<parallel>, #tpu.dimension_semantics<arbitrary>], iteration_bounds = array<i64: 2, 2, 1>, scalar_prefetch = 1 : i64, scratch_operands = 0 : i64, tpu.core_type = #tpu.core_type<tc>, window_params = [{transform_indices = @transform_0, window_bounds = array<i64: 384, 1>}, {transform_indices = @transform_1, window_bounds = array<i64: 32, 384>}, {transform_indices = @transform_2, window_bounds = array<i64: 32, 384>}, {transform_indices = @transform_3, window_bounds = array<i64: 1, 32, 512>}]} {
    %c0_i32 = arith.constant 0 : i32
    %0 = arith.cmpi eq, %arg2, %c0_i32 : i32
    %1 = arith.extui %0 : i1 to i32
    %c0_i32_0 = arith.constant 0 : i32
    %2 = arith.cmpi ne, %1, %c0_i32_0 : i32
    scf.if %2 {
      %cst = arith.constant 0.000000e+00 : f32
      %12 = vector.broadcast %cst : f32 to vector<1x32x512xf32>
      %c0 = arith.constant 0 : index
      %c0_3 = arith.constant 0 : index
      %c0_4 = arith.constant 0 : index
      %13 = vector.load %arg7[%c0, %c0_3, %c0_4] : memref<1x32x512xf32, #tpu.memory_space<vmem>>, vector<1x32x512xf32>
      tpu.vector_store %arg7[%c0, %c0_3, %c0_4], %12 {strides = array<i32>} : memref<1x32x512xf32, #tpu.memory_space<vmem>>, vector<1x32x512xf32>,
    } else {
    }
    %c2_i32 = arith.constant 2 : i32
    %3 = arith.muli %arg1, %c2_i32 : i32
    %4 = arith.addi %3, %arg0 : i32
    %c1_i32 = arith.constant 1 : i32
    %5 = arith.muli %4, %c1_i32 : i32
    %6 = arith.addi %5, %arg2 : i32
    %7 = arith.index_cast %6 : i32 to index
    %8 = memref.load %arg3[%7] : memref<4xi32, #tpu.memory_space<smem>>
    %c0_i32_1 = arith.constant 0 : i32
    %9 = arith.cmpi sgt, %8, %c0_i32_1 : i32
    %10 = arith.extui %9 : i1 to i32
    %c0_i32_2 = arith.constant 0 : i32
    %11 = arith.cmpi ne, %10, %c0_i32_2 : i32
    scf.if %11 {
      %c1024_i32 = arith.constant 1024 : i32
      %12 = arith.muli %arg1, %c1024_i32 : i32
      %c512_i32 = arith.constant 512 : i32
      %13 = arith.muli %arg0, %c512_i32 : i32
      %14 = arith.addi %12, %13 : i32
      %c0 = arith.constant 0 : index
      %c0_3 = arith.constant 0 : index
      %15 = vector.load %arg4[%c0, %c0_3] : memref<384x1xi32, #tpu.memory_space<vmem>>, vector<384x1xi32>
      %16 = vector.broadcast %14 : i32 to vector<384x1xi32>
      %17 = arith.subi %15, %16 : vector<384x1xi32>
      %18 = tpu.iota {dimensions = array<i32: 1>} : vector<1x512xi32>
      %19 = vector.broadcast %17 : vector<384x1xi32> to vector<384x512xi32>
      %20 = vector.broadcast %18 : vector<1x512xi32> to vector<384x512xi32>
      %21 = arith.cmpi eq, %19, %20 : vector<384x512xi32>
      %22 = arith.extui %21 : vector<384x512xi1> to vector<384x512xi32>
      %23 = arith.sitofp %22 : vector<384x512xi32> to vector<384x512xf32>
      %24 = arith.truncf %23 : vector<384x512xf32> to vector<384x512xbf16>
      %c0_4 = arith.constant 0 : index
      %c0_5 = arith.constant 0 : index
      %25 = vector.load %arg5[%c0_4, %c0_5] : memref<32x384xbf16, #tpu.memory_space<vmem>>, vector<32x384xbf16>
      %cst = arith.constant dense<0.000000e+00> : vector<32x512xf32>
      %26 = tpu.matmul %25, %24, %cst {dimension_numbers = #tpu.dot_dimension_numbers<[1], [0], [0], [1], [0, 0, 1, 1], [], []>} : vector<32x384xbf16>, vector<384x512xbf16>, vector<32x512xf32> -> vector<32x512xf32>
      %c0_6 = arith.constant 0 : index
      %c0_7 = arith.constant 0 : index
      %27 = vector.load %arg6[%c0_6, %c0_7] : memref<32x384xbf16, #tpu.memory_space<vmem>>, vector<32x384xbf16>
      %cst_8 = arith.constant dense<0.000000e+00> : vector<32x512xf32>
      %28 = tpu.matmul %27, %24, %cst_8 {dimension_numbers = #tpu.dot_dimension_numbers<[1], [0], [0], [1], [0, 0, 1, 1], [], []>} : vector<32x384xbf16>, vector<384x512xbf16>, vector<32x512xf32> -> vector<32x512xf32>
      %29 = arith.addf %26, %28 : vector<32x512xf32>
      %c0_9 = arith.constant 0 : index
      %c0_10 = arith.constant 0 : index
      %c0_11 = arith.constant 0 : index
      %30 = vector.load %arg7[%c0_9, %c0_10, %c0_11] : memref<1x32x512xf32, #tpu.memory_space<vmem>>, vector<1x32x512xf32>
      %31 = vector.shape_cast %30 : vector<1x32x512xf32> to vector<32x512xf32>
      %32 = arith.addf %31, %29 : vector<32x512xf32>
      %c0_12 = arith.constant 0 : index
      %c0_13 = arith.constant 0 : index
      %c0_14 = arith.constant 0 : index
      %33 = vector.load %arg7[%c0_12, %c0_13, %c0_14] : memref<1x32x512xf32, #tpu.memory_space<vmem>>, vector<1x32x512xf32>
      %34 = vector.shape_cast %33 : vector<1x32x512xf32> to vector<32x512xf32>
      %35 = vector.shape_cast %32 : vector<32x512xf32> to vector<1x32x512xf32>
      tpu.vector_store %arg7[%c0_12, %c0_13, %c0_14], %35 {strides = array<i32>} : memref<1x32x512xf32, #tpu.memory_space<vmem>>, vector<1x32x512xf32>,
    } else {
    }
    return
  }
  func.func @transform_0(%arg0: i32, %arg1: i32, %arg2: i32, %arg3: memref<4xi32, #tpu.memory_space<smem>>) -> (i32, i32) {
    %c0_i32 = arith.constant 0 : i32
    %c0_i32_0 = arith.constant 0 : i32
    return %arg2, %c0_i32 : i32, i32
  }
  func.func @transform_1(%arg0: i32, %arg1: i32, %arg2: i32, %arg3: memref<4xi32, #tpu.memory_space<smem>>) -> (i32, i32) {
    %c0_i32 = arith.constant 0 : i32
    %c0_i32_0 = arith.constant 0 : i32
    return %c0_i32, %arg2 : i32, i32
  }
  func.func @transform_2(%arg0: i32, %arg1: i32, %arg2: i32, %arg3: memref<4xi32, #tpu.memory_space<smem>>) -> (i32, i32) {
    %c0_i32 = arith.constant 0 : i32
    %c0_i32_0 = arith.constant 0 : i32
    return %c0_i32, %arg2 : i32, i32
  }
  func.func @transform_3(%arg0: i32, %arg1: i32, %arg2: i32, %arg3: memref<4xi32, #tpu.memory_space<smem>>) -> (i32, i32, i32) {
    %c0_i32 = arith.constant 0 : i32
    %c0_i32_0 = arith.constant 0 : i32
    return %arg1, %c0_i32, %arg0 : i32, i32, i32
  }
}

</mosaic_0001>

<bundles_post_ra>
// kernel: tpu_custom_call.1
= control target key start
LH: loop header
LB: loop body
LE: loop exit
PB: predicated region body
PF: predicated region fallthrough
CT: control target
= control target key end

     0   :  { %s4774_s0 = inlined_call_operand.vmem [shape: s32[4], index: 0, kind: input, shape index: {}]   ;;  %s4775_s1 = inlined_call_operand.vmem [shape: s32[384,1], index: 1, kind: input, shape index: {}]   ;;  %s4776_s2 = inlined_call_operand.vmem [shape: bf16[32,384], index: 2, kind: input, shape index: {}]   ;;  %s4777_s3 = inlined_call_operand.vmem [shape: bf16[32,384], index: 3, kind: input, shape index: {}]   ;;  %s4778_s4 = inlined_call_operand.hbm [shape: f32[2,32,1024], index: 4, kind: output, shape index: {}]  }
   0x1   :  { %s9_s17 = sshll.u32 %s4774_s0, 4  ;;  %s10_s17 = int_to_ptr.vmem [resolvable:$true] %s9_s17 }
   0x2   :  { %s2576_s18 = scalar_lea.vmem %s10_s17, 16  ;;  %p2581_p1 = scmp.lt.s32.totalorder %s10_s17, %s10_s17 }
   0x3   :  { %p2577_p0 = scmp.ne.s32.totalorder %s10_s17, %s2576_s18  ;;  %p2582_p2 = scmp.lt.s32.totalorder %s2576_s18, %s2576_s18 }
   0x5   :  { %p2583_p3 = por %p2582_p2, %p2581_p1 }
   0x7   :  { %p2584_p4 = pnand %p2583_p3, %p2577_p0 }
   0x9   :  { %2587 = shalt.err (!%p2584_p4)  }
   0xa   :  { %s2684_s19 = smov [#allocation3]  }
   0xb   :  { %12 = dma.vmem_to_smem %s10_s17, 16, %s2684_s19, [#allocation2] }
   0xc   :  { %2646 = dma.done.wait [#allocation2], 16 }
   0xd   :  { %2647 = vsyncadd [#allocation2], 4294967280 }
   0xe   :  { %14 = sfence }
   0xf   :  { %15 = vsyncpa [#allocation5], 0 }
  0x10   :  { %17 = vsyncpa [#allocation5 + $0x1], 0  ;;  %s2720_s20 = smov 0   ;;  %s2722_s21 = smov 0  }
  0x11   :  { %s2724_s0 = smov 0   ;;  %s2726_s22 = smov 0  }
  0x12   :  { %s2728_s23 = smov 0   ;;  %s2730_s24 = smov 0  }
  0x13   :  { %s2732_s25 = smov 0   ;;  %s2734_s26 = smov 0  }
  0x14 LB: > { %s1874_s27 = sadd.s32 4294967295, %s2682_s26   ;;  %s1875_s28 = sadd.s32 4294967294, %s2682_s26   ;;  %s2682_s26 = sphi %s2734_s26, %s23_s26   ;;  %s2678_s25 = sphi %s2732_s25, %s5330_s25   ;;  %s2674_s24 = sphi %s2730_s24, %s5329_s24   ;;  %s2670_s23 = sphi %s2728_s23, %s5328_s23   ;;  %s2666_s22 = sphi %s2726_s22, %s5327_s22   ;;  %s2662_s0 = sphi %s2724_s0, %s5326_s0   ;;  %s2658_s21 = sphi %s2722_s21, %s5325_s21   ;;  %s2654_s20 = sphi %s2720_s20, %s5324_s20  }
  0x15   : > { %s38_s29 = sadd.s32 1, %s2674_s24  ;;  %s42_s30 = sadd.s32 1, %s2678_s25 }
  0x16   : > { %p40_p5 = scmp.ge.s32.totalorder %s38_s29, 2  ;;  %p139_p6 = scmp.ne.s32.totalorder %s2662_s0, %s2658_s21 }
  0x17   : > { %p140_p7 = scmp.eq.s32.totalorder %s1874_s27, 3  ;;  %p145_p10 = scmp.ne.s32.totalorder %s2658_s21, %s2654_s20 }
  0x18   : > { %s5332_s29 = smov (%p40_p5, %s38_s29), 0  ;;  %s5334_s30 = smov (!%p40_p5, %s42_s30), %s2678_s25 }
  0x19   : > { %s124_s5 = ssub.s32 %s2674_s24, %s5332_s29  ;;  %p2771_p8 = por %p140_p7, %p139_p6 }
  0x1a   : > { %p44_p9 = scmp.ge.s32.totalorder %s5334_s30, 2  ;;  %p146_p11 = scmp.eq.s32.totalorder %s1875_s28, 3 }
  0x1b   : > { %p1880_p12 = scmp.ge.s32.totalorder %s2682_s26, 1  ;;  %p191_p0 = scmp.lt.s32.totalorder %s2682_s26, 5 }
  0x1c   : > { %s5336_s30 = smov (%p44_p9, %s5334_s30), 0  ;;  %p2780_p13 = por %p146_p11, %p145_p10 }
  0x1d   : > { %s125_s8 = ssub.s32 %s2678_s25, %s5336_s30  ;;  %s129_s9 = sadd.s32 1, %s2662_s0 }
  0x1e   : > { %s126_s10 = sor.u32 %s125_s8, %s124_s5  ;;  %p192_p1 = pnand %p1880_p12, %p191_p0 }
  0x1f   : > { %p127_p2 = scmp.eq.s32.totalorder %s126_s10, 0  ;;  %s222_s12 = sand.u32 (!%p192_p1), 1, %s2658_s21  }
  0x20   : > { %195 = sbr.rel (%p192_p1) target bundleno = 646 (0x286), region = 32  ;;  %s1882_s13 = sshll.u32 (!%p192_p1), %s2666_s22, 1 }
  0x21   : > { %s2789_s11 = scalar_select %p127_p2, %s2662_s0, %s129_s9  }
  0x22   : > { %s1881_s14 = sshll.u32 (!%p192_p1), %s222_s12, 7  ;;  %s266_s15 = sadd.s32 (!%p192_p1), %s2670_s23, %s1882_s13 }
  0x23   : > { %s268_s16 = sld [smem:[#allocation3 + %s266_s15]] (!%p192_p1)  ;;  %s2796_s17 = scalar_lea.vmem (!%p192_p1), [#allocation4], %s1881_s14 }
  0x25   : > { %v2685_v0 = vmov 0.0  }
  0x26   : > { %249 = vst [vmem:[%s2796_s17] sm:$0xff] %v2685_v0  ;;  %250 = vst [vmem:[%s2796_s17 + $0x8] sm:$0xff] %v2685_v0 }
  0x27   : > { %251 = vst [vmem:[%s2796_s17 + $0x10] sm:$0xff] %v2685_v0  ;;  %252 = vst [vmem:[%s2796_s17 + $0x18] sm:$0xff] %v2685_v0 }
  0x28   : > { %253 = vst [vmem:[%s2796_s17 + $0x20] sm:$0xff] %v2685_v0  ;;  %254 = vst [vmem:[%s2796_s17 + $0x28] sm:$0xff] %v2685_v0 }
  0x29   : > { %255 = vst [vmem:[%s2796_s17 + $0x30] sm:$0xff] %v2685_v0  ;;  %256 = vst [vmem:[%s2796_s17 + $0x38] sm:$0xff] %v2685_v0  ;;  %p1883_p3 = scmp.le.s32.totalorder %s268_s16, 0 }
  0x2a   : > { %257 = vst [vmem:[%s2796_s17 + $0x40] sm:$0xff] %v2685_v0  ;;  %258 = vst [vmem:[%s2796_s17 + $0x48] sm:$0xff] %v2685_v0 }
  0x2b   : > { %259 = vst [vmem:[%s2796_s17 + $0x50] sm:$0xff] %v2685_v0  ;;  %260 = vst [vmem:[%s2796_s17 + $0x58] sm:$0xff] %v2685_v0  ;;  %272 = sbr.rel (%p1883_p3) target bundleno = 619 (0x26b), region = 40 }
  0x2c   : > { %261 = vst [vmem:[%s2796_s17 + $0x60] sm:$0xff] %v2685_v0  ;;  %262 = vst [vmem:[%s2796_s17 + $0x68] sm:$0xff] %v2685_v0 }
  0x2d   : > { %263 = vst [vmem:[%s2796_s17 + $0x70] sm:$0xff] %v2685_v0  ;;  %264 = vst [vmem:[%s2796_s17 + $0x78] sm:$0xff] %v2685_v0 }
  0x30   : > { %s1884_s18 = sshll.u32 %s2666_s22, 10  ;;  %s1885_s19 = sshll.u32 %s2670_s23, 9  ;;  %v322_v1 = vld [vmem:[%s4775_s1 + $0x170] sm:$0xff]  ;;  %v4807_v3 = vmov 0   ;;  %v323_v5 = vld [vmem:[%s4775_s1 + $0x178] sm:$0xff]  ;;  %v320_v11 = vld [vmem:[%s4775_s1 + $0x160] sm:$0xff] }
  0x31   : > { %v290_v2 = vld [vmem:[%s4775_s1 + $0x70] sm:$0xff]  ;;  %2559 = vset.pattern.permute.xlu1 %v4807_v3  ;;  %2558 = vset.pattern.permute.xlu0 %v4807_v3  ;;  %s275_s9 = sadd.s32 %s1885_s19, %s1884_s18  ;;  %v291_v6 = vld [vmem:[%s4775_s1 + $0x78] sm:$0xff]  ;;  %v321_v12 = vld [vmem:[%s4775_s1 + $0x168] sm:$0xff] }
  0x32   : > { %v2824_v4 = vstv %s275_s9  ;;  %1327 = vmatprep.mubr.bf16.mxu1 %v4807_v3  ;;  %v289_v15 = vld [vmem:[%s4775_s1 + $0x68] sm:$0xff]  ;;  %v288_v16 = vld [vmem:[%s4775_s1 + $0x60] sm:$0xff]  ;;  %v319_v19 = vld [vmem:[%s4775_s1 + $0x158] sm:$0xff]  ;;  %v5003_v3 = vmov 0 }
  0x33   : > { %v371_v7 = vsub.s32 %v322_v1, %v2824_v4  ;;  %v339_v8 = vsub.s32 %v290_v2, %v2824_v4  ;;  %v372_v9 = vsub.s32 %v323_v5, %v2824_v4  ;;  %v340_v10 = vsub.s32 %v291_v6, %v2824_v4  ;;  %v318_v20 = vld [vmem:[%s4775_s1 + $0x150] sm:$0xff]  ;;  %v287_v21 = vld [vmem:[%s4775_s1 + $0x58] sm:$0xff]  ;;  %v317_v27 = vld [vmem:[%s4775_s1 + $0x148] sm:$0xff] }
  0x34   : > { %v369_v13 = vsub.s32 %v320_v11, %v2824_v4  ;;  %v370_v14 = vsub.s32 %v321_v12, %v2824_v4  ;;  %v338_v17 = vsub.s32 %v289_v15, %v2824_v4  ;;  %v337_v18 = vsub.s32 %v288_v16, %v2824_v4  ;;  %v286_v22 = vld [vmem:[%s4775_s1 + $0x50] sm:$0xff]  ;;  %v316_v28 = vld [vmem:[%s4775_s1 + $0x140] sm:$0xff]  ;;  %v285_v31 = vld [vmem:[%s4775_s1 + $0x48] sm:$0xff] }
  0x35   : > { %517 = vperm.xlu0 %2558, %v371_v7   ;;  %421 = vperm.xlu1 %2559, %v339_v8   ;;  %v368_v23 = vsub.s32 %v319_v19, %v2824_v4  ;;  %v367_v24 = vsub.s32 %v318_v20, %v2824_v4  ;;  %v336_v25 = vsub.s32 %v287_v21, %v2824_v4  ;;  %v284_v32 = vld [vmem:[%s4775_s1 + $0x40] sm:$0xff]  ;;  %v315_v35 = vld [vmem:[%s4775_s1 + $0x138] sm:$0xff]  ;;  %v314_v36 = vld [vmem:[%s4775_s1 + $0x130] sm:$0xff] }
  0x36   : > { %v335_v26 = vsub.s32 %v286_v22, %v2824_v4  ;;  %v366_v29 = vsub.s32 %v317_v27, %v2824_v4  ;;  %v365_v30 = vsub.s32 %v316_v28, %v2824_v4  ;;  %v334_v33 = vsub.s32 %v285_v31, %v2824_v4  ;;  %v283_v39 = vld [vmem:[%s4775_s1 + $0x38] sm:$0xff]  ;;  %v282_v40 = vld [vmem:[%s4775_s1 + $0x30] sm:$0xff]  ;;  %v313_v43 = vld [vmem:[%s4775_s1 + $0x128] sm:$0xff] }
  0x37   : > { %v333_v34 = vsub.s32 %v284_v32, %v2824_v4  ;;  %v364_v37 = vsub.s32 %v315_v35, %v2824_v4  ;;  %v363_v38 = vsub.s32 %v314_v36, %v2824_v4  ;;  %v332_v41 = vsub.s32 %v283_v39, %v2824_v4  ;;  %v312_v44 = vld [vmem:[%s4775_s1 + $0x120] sm:$0xff]  ;;  %v281_v47 = vld [vmem:[%s4775_s1 + $0x28] sm:$0xff]  ;;  %v311_v51 = vld [vmem:[%s4775_s1 + $0x118] sm:$0xff] }
  0x38   : > { %v331_v42 = vsub.s32 %v282_v40, %v2824_v4  ;;  %v362_v45 = vsub.s32 %v313_v43, %v2824_v4  ;;  %v361_v46 = vsub.s32 %v312_v44, %v2824_v4  ;;  %v280_v48 = vld [vmem:[%s4775_s1 + $0x20] sm:$0xff]  ;;  %v330_v49 = vsub.s32 %v281_v47, %v2824_v4  ;;  %v310_v52 = vld [vmem:[%s4775_s1 + $0x110] sm:$0xff]  ;;  %v279_v55 = vld [vmem:[%s4775_s1 + $0x18] sm:$0xff] }
  0x39   : > { %520 = vperm.xlu0 %2558, %v372_v9   ;;  %424 = vperm.xlu1 %2559, %v340_v10   ;;  %v329_v50 = vsub.s32 %v280_v48, %v2824_v4  ;;  %v360_v53 = vsub.s32 %v311_v51, %v2824_v4  ;;  %v359_v54 = vsub.s32 %v310_v52, %v2824_v4  ;;  %v278_v56 = vld [vmem:[%s4775_s1 + $0x10] sm:$0xff]  ;;  %v309_v59 = vld [vmem:[%s4775_s1 + $0x108] sm:$0xff]  ;;  %v308_v60 = vld [vmem:[%s4775_s1 + $0x100] sm:$0xff]  ;;  %v4917_v44 = vmov 0 }
  0x3a   : > { %v328_v57 = vsub.s32 %v279_v55, %v2824_v4  ;;  %v327_v58 = vsub.s32 %v278_v56, %v2824_v4  ;;  %v358_v61 = vsub.s32 %v309_v59, %v2824_v4  ;;  %v357_v62 = vsub.s32 %v308_v60, %v2824_v4  ;;  %v277_v63 = vld [vmem:[%s4775_s1 + $0x8] sm:$0xff]  ;;  %v276_v0 = vld [vmem:[%s4775_s1] sm:$0xff]  ;;  %v307_v5 = vld [vmem:[%s4775_s1 + $0xf8] sm:$0xff] }
  0x3b   : > { %v326_v1 = vsub.s32 %v277_v63, %v2824_v4  ;;  %v325_v2 = vsub.s32 %v276_v0, %v2824_v4  ;;  %v306_v6 = vld [vmem:[%s4775_s1 + $0xf0] sm:$0xff]  ;;  %v356_v7 = vsub.s32 %v307_v5, %v2824_v4  ;;  %v305_v9 = vld [vmem:[%s4775_s1 + $0xe8] sm:$0xff]  ;;  %v304_v10 = vld [vmem:[%s4775_s1 + $0xe0] sm:$0xff]  ;;  %v4921_v47 = vmov 0 }
  0x3c   : > { %v355_v8 = vsub.s32 %v306_v6, %v2824_v4  ;;  %v354_v11 = vsub.s32 %v305_v9, %v2824_v4  ;;  %v353_v12 = vsub.s32 %v304_v10, %v2824_v4  ;;  %v299_v21 = vld [vmem:[%s4775_s1 + $0xb8] sm:$0xff]  ;;  %v298_v22 = vld [vmem:[%s4775_s1 + $0xb0] sm:$0xff]  ;;  %v4925_v51 = vmov 0 }
  0x3d   : > { %511 = vperm.xlu0 %2558, %v369_v13   ;;  %514 = vperm.xlu1 %2559, %v370_v14   ;;  %v303_v13 = vld [vmem:[%s4775_s1 + $0xd8] sm:$0xff]  ;;  %v302_v14 = vld [vmem:[%s4775_s1 + $0xd0] sm:$0xff]  ;;  %v4927_v52 = vmov 0  ;;  %v4929_v55 = vmov 0  ;;  %v4931_v56 = vmov 0  ;;  %v4942_v5 = vmov 0 }
  0x3e   : > { %v352_v15 = vsub.s32 %v303_v13, %v2824_v4  ;;  %v351_v16 = vsub.s32 %v302_v14, %v2824_v4  ;;  %v4944_v6 = vmov 0  ;;  %v4946_v9 = vmov 0 }
  0x3f   : > { %v4948_v10 = vmov 0  ;;  %v4950_v13 = vmov 0  ;;  %v4952_v14 = vmov 0 }
  0x41   : > { %418 = vperm.xlu1 %2559, %v338_v17   ;;  %415 = vperm.xlu0 %2558, %v337_v18   ;;  %v301_v17 = vld [vmem:[%s4775_s1 + $0xc8] sm:$0xff]  ;;  %v300_v18 = vld [vmem:[%s4775_s1 + $0xc0] sm:$0xff] }
  0x42   : > { %v350_v19 = vsub.s32 %v301_v17, %v2824_v4  ;;  %v349_v20 = vsub.s32 %v300_v18, %v2824_v4 }
  0x45   : > { %508 = vperm.xlu1 %2559, %v368_v23   ;;  %505 = vperm.xlu0 %2558, %v367_v24   ;;  %v348_v23 = vsub.s32 %v299_v21, %v2824_v4  ;;  %v347_v24 = vsub.s32 %v298_v22, %v2824_v4 }
  0x49   : > { %412 = vperm.xlu1 %2559, %v336_v25   ;;  %409 = vperm.xlu0 %2558, %v335_v26   ;;  %v297_v25 = vld [vmem:[%s4775_s1 + $0xa8] sm:$0xff]  ;;  %v296_v26 = vld [vmem:[%s4775_s1 + $0xa0] sm:$0xff] }
  0x4a   : > { %v346_v27 = vsub.s32 %v297_v25, %v2824_v4  ;;  %v345_v28 = vsub.s32 %v296_v26, %v2824_v4  ;;  %v4966_v25 = vmov 0  ;;  %v4969_v26 = vmov 0 }
  0x4d   : > { %502 = vperm.xlu1 %2559, %v366_v29   ;;  %499 = vperm.xlu0 %2558, %v365_v30   ;;  %v295_v29 = vld [vmem:[%s4775_s1 + $0x98] sm:$0xff]  ;;  %v294_v30 = vld [vmem:[%s4775_s1 + $0x90] sm:$0xff] }
  0x4e   : > { %v344_v31 = vsub.s32 %v295_v29, %v2824_v4  ;;  %v343_v32 = vsub.s32 %v294_v30, %v2824_v4  ;;  %v4972_v29 = vmov 0  ;;  %v4974_v30 = vmov 0 }
  0x51   : > { %406 = vperm.xlu1 %2559, %v334_v33   ;;  %403 = vperm.xlu0 %2558, %v333_v34   ;;  %v293_v33 = vld [vmem:[%s4775_s1 + $0x88] sm:$0xff]  ;;  %v292_v34 = vld [vmem:[%s4775_s1 + $0x80] sm:$0xff] }
  0x52   : > { %v342_v35 = vsub.s32 %v293_v33, %v2824_v4  ;;  %v341_v36 = vsub.s32 %v292_v34, %v2824_v4  ;;  %v4977_v33 = vmov 0  ;;  %v4979_v34 = vmov 0 }
  0x55   : > { %496 = vperm.xlu1 %2559, %v364_v37   ;;  %493 = vperm.xlu0 %2558, %v363_v38   ;;  %v3016_v37 = vld [vmem:[%s4777_s3 + $0x4] ss:$12 sps:$4 sm:$0xff]   ;;  %v373_v38 = vlaneseq }
  0x56   : > { %1274 = vmatprep.mubr.bf16.mxu0 %v3016_v37 }
  0x57   : > { %v3019_v39 = vand.u32 127, %v373_v38 }
  0x59   : > { %400 = vperm.xlu1 %2559, %v332_v41   ;;  %397 = vperm.xlu0 %2558, %v331_v42   ;;  %v3026_v42 = vadd.s32 128, %v3019_v39 }
  0x5d   : > { %490 = vperm.xlu1 %2559, %v362_v45   ;;  %487 = vperm.xlu0 %2558, %v361_v46   ;;  %v4834_v45 = vmov 1.0|1.0   ;;  %v4919_v46 = vmov 0 }
  0x61   : > { %394 = vperm.xlu1 %2559, %v330_v49   ;;  %391 = vperm.xlu0 %2558, %v329_v50   ;;  %v4923_v50 = vmov 0 }
  0x65   : > { %484 = vperm.xlu1 %2559, %v360_v53   ;;  %481 = vperm.xlu0 %2558, %v359_v54  }
  0x69   : > { %388 = vperm.xlu1 %2559, %v328_v57   ;;  %385 = vperm.xlu0 %2558, %v327_v58   ;;  %v3122_v57 = vadd.s32 384, %v3019_v39  ;;  %v3125_v58 = vadd.s32 256, %v3019_v39 }
  0x6d   : > { %478 = vperm.xlu1 %2559, %v358_v61   ;;  %475 = vperm.xlu0 %2558, %v357_v62   ;;  %v4933_v61 = vmov 0  ;;  %v4935_v62 = vmov 0 }
  0x71   : > { %382 = vperm.xlu1 %2559, %v326_v1   ;;  %379 = vperm.xlu0 %2558, %v325_v2   ;;  %v4937_v1 = vmov 0  ;;  %v4940_v2 = vmov 0 }
  0x75   : > { %472 = vperm.xlu1 %2559, %v356_v7   ;;  %469 = vperm.xlu0 %2558, %v355_v8  }
  0x79   : > { %466 = vperm.xlu1 %2559, %v354_v11   ;;  %463 = vperm.xlu0 %2558, %v353_v12  }
  0x7d   : > { %460 = vperm.xlu1 %2559, %v352_v15   ;;  %457 = vperm.xlu0 %2558, %v351_v16   ;;  %v4954_v15 = vmov 0  ;;  %v4956_v16 = vmov 0 }
  0x81   : > { %454 = vperm.xlu1 %2559, %v350_v19   ;;  %451 = vperm.xlu0 %2558, %v349_v20   ;;  %v4958_v19 = vmov 0  ;;  %v4960_v20 = vmov 0 }
  0x85   : > { %448 = vperm.xlu1 %2559, %v348_v23   ;;  %445 = vperm.xlu0 %2558, %v347_v24   ;;  %v4962_v23 = vmov 0  ;;  %v4964_v24 = vmov 0 }
  0x89   : > { %442 = vperm.xlu1 %2559, %v346_v27   ;;  %439 = vperm.xlu0 %2558, %v345_v28  }
  0x8d   : > { %436 = vperm.xlu1 %2559, %v344_v31   ;;  %433 = vperm.xlu0 %2558, %v343_v32  }
  0x91   : > { %430 = vperm.xlu1 %2559, %v342_v35   ;;  %427 = vperm.xlu0 %2558, %v341_v36   ;;  %v4981_v35 = vmov 0  ;;  %v4984_v36 = vmov 0 }
  0xb0   : > { %v3021_v40 = vpop.permute.xlu0 %517  ;;  %v3023_v41 = vpop.permute.xlu1 %421 }
  0xb1   : > { %vm579_vm0 = vcmp.eq.s32.totalorder %v3023_v41, %v3026_v42  ;;  %vm707_vm4 = vcmp.eq.s32.totalorder %v3021_v40, %v3026_v42  ;;  %vm706_vm8 = vcmp.eq.s32.totalorder %v3021_v40, %v3019_v39  ;;  %vm578_vm10 = vcmp.eq.s32.totalorder %v3023_v41, %v3019_v39 }
  0xb4   : > { %v521_v4 = vpop.permute.xlu0 %520  ;;  %v3028_v43 = vpop.permute.xlu1 %424 }
  0xb5   : > { %vm583_vm1 = vcmp.eq.s32.totalorder %v3028_v43, %v3026_v42  ;;  %vm711_vm2 = vcmp.eq.s32.totalorder %v521_v4, %v3026_v42  ;;  %vm710_vm5 = vcmp.eq.s32.totalorder %v521_v4, %v3019_v39  ;;  %vm582_vm6 = vcmp.eq.s32.totalorder %v3028_v43, %v3019_v39 }
  0xb6   : > { %vm3035_vm3 = vmpackc.low %vm583_vm1, %vm579_vm0 }
  0xb7   : > { %v4918_v44 = vsel %vm3035_vm3, 4294967295, %v4917_v44  ;;  %2085 = vmatprep.subr.msk.bf16.mxu0 %vm3035_vm3, %v4834_v45  ;;  %vm3047_vm7 = vmpackc.low %vm711_vm2, %vm707_vm4 }
  0xb8   : > { %v4920_v46 = vsel %vm3047_vm7, 4294967295, %v4919_v46  ;;  %2149 = vmatprep.subr.msk.bf16.mxu1 %vm3047_vm7, %v4834_v45  ;;  %vm3056_vm9 = vmpackc.low %vm710_vm5, %vm706_vm8  ;;  %v3060_v48 = vpop.permute.xlu0 %511  ;;  %v3064_v49 = vpop.permute.xlu1 %514 }
  0xb9   : > { %v4922_v47 = vsel %vm3056_vm9, 4294967295, %v4921_v47  ;;  %2151 = vmatpush1.bf16.msk.msra.mxu1 %vm3056_vm9, %v4834_v45  ;;  %vm3069_vm11 = vmpackc.low %vm582_vm6, %vm578_vm10  ;;  %vm699_vm12 = vcmp.eq.s32.totalorder %v3060_v48, %v3026_v42  ;;  %vm703_vm13 = vcmp.eq.s32.totalorder %v3064_v49, %v3026_v42  ;;  %vm698_vm15 = vcmp.eq.s32.totalorder %v3060_v48, %v3019_v39 }
  0xba   : > { %v4924_v50 = vsel %vm3069_vm11, 4294967295, %v4923_v50  ;;  %2087 = vmatpush1.bf16.msk.msra.mxu0 %vm3069_vm11, %v4834_v45  ;;  %vm3080_vm14 = vmpackc.low %vm703_vm13, %vm699_vm12  ;;  %vm702_vm0 = vcmp.eq.s32.totalorder %v3064_v49, %v3019_v39 }
  0xbb   : > { %v4926_v51 = vsel %vm3080_vm14, 4294967295, %v4925_v51  ;;  %2153 = vmatprep.subr.msk.bf16.mxu1 %vm3080_vm14, %v4834_v45  ;;  %vm3091_vm1 = vmpackc.low %vm702_vm0, %vm698_vm15  ;;  %vm713_vm15 = vcmp.eq.s32.totalorder %v521_v4, %v3122_v57  ;;  %vm712_vm0 = vcmp.eq.s32.totalorder %v521_v4, %v3125_v58  ;;  %v4987_v4 = vmov 0 }
  0xbc   : > { %v4928_v52 = vsel %vm3091_vm1, 4294967295, %v4927_v52  ;;  %v3095_v53 = vpop.permute.xlu1 %418  ;;  %v3097_v54 = vpop.permute.xlu0 %415 }
  0xbd   : > { %2155 = vmatpush1.bf16.msk.msra.mxu1 %vm3091_vm1, %v4834_v45  ;;  %vm571_vm2 = vcmp.eq.s32.totalorder %v3097_v54, %v3026_v42  ;;  %vm575_vm4 = vcmp.eq.s32.totalorder %v3095_v53, %v3026_v42  ;;  %vm570_vm6 = vcmp.eq.s32.totalorder %v3097_v54, %v3019_v39  ;;  %vm574_vm8 = vcmp.eq.s32.totalorder %v3095_v53, %v3019_v39 }
  0xbe   : > { %vm3106_vm5 = vmpackc.low %vm575_vm4, %vm571_vm2 }
  0xbf   : > { %v4930_v55 = vsel %vm3106_vm5, 4294967295, %v4929_v55  ;;  %2089 = vmatprep.subr.msk.bf16.mxu0 %vm3106_vm5, %v4834_v45  ;;  %vm3117_vm10 = vmpackc.low %vm574_vm8, %vm570_vm6 }
  0xc0   : > { %v4932_v56 = vsel %vm3117_vm10, 4294967295, %v4931_v56  ;;  %v3127_v59 = vpop.permute.xlu1 %508  ;;  %2091 = vmatpush1.bf16.msk.msra.mxu0 %vm3117_vm10, %v4834_v45  ;;  %v3132_v60 = vpop.permute.xlu0 %505 }
  0xc1   : > { %vm691_vm12 = vcmp.eq.s32.totalorder %v3132_v60, %v3026_v42  ;;  %vm695_vm13 = vcmp.eq.s32.totalorder %v3127_v59, %v3026_v42  ;;  %vm690_vm4 = vcmp.eq.s32.totalorder %v3132_v60, %v3019_v39  ;;  %vm694_vm6 = vcmp.eq.s32.totalorder %v3127_v59, %v3019_v39 }
  0xc2   : > { %vm3140_vm2 = vmpackc.low %vm695_vm13, %vm691_vm12  ;;  %vm709_vm12 = vcmp.eq.s32.totalorder %v3021_v40, %v3122_v57  ;;  %vm708_vm13 = vcmp.eq.s32.totalorder %v3021_v40, %v3125_v58 }
  0xc3   : > { %v4934_v61 = vsel %vm3140_vm2, 4294967295, %v4933_v61  ;;  %2157 = vmatprep.subr.msk.bf16.mxu1 %vm3140_vm2, %v4834_v45  ;;  %vm3151_vm8 = vmpackc.low %vm694_vm6, %vm690_vm4 }
  0xc4   : > { %v4936_v62 = vsel %vm3151_vm8, 4294967295, %v4935_v62  ;;  %2159 = vmatpush1.bf16.msk.msra.mxu1 %vm3151_vm8, %v4834_v45  ;;  %v3162_v63 = vpop.permute.xlu1 %412  ;;  %v3164_v0 = vpop.permute.xlu0 %409  ;;  %vm3166_vm10 = vmpackc.low %vm713_vm15, %vm709_vm12 }
  0xc5   : > { %v4938_v1 = vsel %vm3166_vm10, 4294967295, %v4937_v1  ;;  %vm563_vm4 = vcmp.eq.s32.totalorder %v3164_v0, %v3026_v42  ;;  %vm567_vm6 = vcmp.eq.s32.totalorder %v3162_v63, %v3026_v42  ;;  %vm3174_vm5 = vmpackc.low %vm712_vm0, %vm708_vm13  ;;  %vm562_vm15 = vcmp.eq.s32.totalorder %v3164_v0, %v3019_v39 }
  0xc6   : > { %4939 = vst [vmem:[#allocation8_spill] sm:$0xff] %v4938_v1  ;;  %v4941_v2 = vsel %vm3174_vm5, 4294967295, %v4940_v2  ;;  %vm3178_vm11 = vmpackc.low %vm567_vm6, %vm563_vm4  ;;  %vm566_vm12 = vcmp.eq.s32.totalorder %v3162_v63, %v3019_v39  ;;  %vm701_vm4 = vcmp.eq.s32.totalorder %v3060_v48, %v3122_v57  ;;  %vm705_vm6 = vcmp.eq.s32.totalorder %v3064_v49, %v3122_v57 }
  0xc7   : > { %v4943_v5 = vsel %vm3178_vm11, 4294967295, %v4942_v5  ;;  %2093 = vmatprep.subr.msk.bf16.mxu0 %vm3178_vm11, %v4834_v45  ;;  %vm3189_vm8 = vmpackc.low %vm566_vm12, %vm562_vm15  ;;  %vm700_vm15 = vcmp.eq.s32.totalorder %v3060_v48, %v3125_v58  ;;  %vm704_vm12 = vcmp.eq.s32.totalorder %v3064_v49, %v3125_v58  ;;  %v4990_v48 = vmov 0 }
  0xc8   : > { %v4945_v6 = vsel %vm3189_vm8, 4294967295, %v4944_v6  ;;  %v3193_v7 = vpop.permute.xlu1 %502  ;;  %2095 = vmatpush1.bf16.msk.msra.mxu0 %vm3189_vm8, %v4834_v45  ;;  %v3198_v8 = vpop.permute.xlu0 %499 }
  0xc9   : > { %vm683_vm0 = vcmp.eq.s32.totalorder %v3198_v8, %v3026_v42  ;;  %vm687_vm13 = vcmp.eq.s32.totalorder %v3193_v7, %v3026_v42  ;;  %vm682_vm11 = vcmp.eq.s32.totalorder %v3198_v8, %v3019_v39  ;;  %vm686_vm2 = vcmp.eq.s32.totalorder %v3193_v7, %v3019_v39 }
  0xca   : > { %vm3212_vm8 = vmpackc.low %vm687_vm13, %vm683_vm0 }
  0xcb   : > { %v4947_v9 = vsel %vm3212_vm8, 4294967295, %v4946_v9  ;;  %2161 = vmatprep.subr.msk.bf16.mxu1 %vm3212_vm8, %v4834_v45  ;;  %vm3223_vm1 = vmpackc.low %vm686_vm2, %vm682_vm11 }
  0xcc   : > { %v4949_v10 = vsel %vm3223_vm1, 4294967295, %v4948_v10  ;;  %2163 = vmatpush1.bf16.msk.msra.mxu1 %vm3223_vm1, %v4834_v45  ;;  %v3230_v11 = vpop.permute.xlu1 %406  ;;  %v3232_v12 = vpop.permute.xlu0 %403  ;;  %vm3234_vm0 = vmpackc.low %vm705_vm6, %vm701_vm4 }
  0xcd   : > { %v4951_v13 = vsel %vm3234_vm0, 4294967295, %v4950_v13  ;;  %vm555_vm13 = vcmp.eq.s32.totalorder %v3232_v12, %v3026_v42  ;;  %vm559_vm11 = vcmp.eq.s32.totalorder %v3230_v11, %v3026_v42  ;;  %vm3242_vm2 = vmpackc.low %vm704_vm12, %vm700_vm15  ;;  %vm554_vm4 = vcmp.eq.s32.totalorder %v3232_v12, %v3019_v39 }
  0xce   : > { %v4953_v14 = vsel %vm3242_vm2, 4294967295, %v4952_v14  ;;  %vm3246_vm8 = vmpackc.low %vm559_vm11, %vm555_vm13  ;;  %vm558_vm6 = vcmp.eq.s32.totalorder %v3230_v11, %v3019_v39  ;;  %vm693_vm13 = vcmp.eq.s32.totalorder %v3132_v60, %v3122_v57  ;;  %vm697_vm11 = vcmp.eq.s32.totalorder %v3127_v59, %v3122_v57 }
  0xcf   : > { %v4955_v15 = vsel %vm3246_vm8, 4294967295, %v4954_v15  ;;  %2097 = vmatprep.subr.msk.bf16.mxu0 %vm3246_vm8, %v4834_v45  ;;  %vm3257_vm1 = vmpackc.low %vm558_vm6, %vm554_vm4  ;;  %vm696_vm4 = vcmp.eq.s32.totalorder %v3127_v59, %v3125_v58  ;;  %vm692_vm6 = vcmp.eq.s32.totalorder %v3132_v60, %v3125_v58  ;;  %v4994_v60 = vmov 0 }
  0xd0   : > { %v4957_v16 = vsel %vm3257_vm1, 4294967295, %v4956_v16  ;;  %v3261_v17 = vpop.permute.xlu1 %496  ;;  %2099 = vmatpush1.bf16.msk.msra.mxu0 %vm3257_vm1, %v4834_v45  ;;  %v3266_v18 = vpop.permute.xlu0 %493 }
  0xd1   : > { %vm675_vm15 = vcmp.eq.s32.totalorder %v3266_v18, %v3026_v42  ;;  %vm679_vm12 = vcmp.eq.s32.totalorder %v3261_v17, %v3026_v42  ;;  %vm674_vm8 = vcmp.eq.s32.totalorder %v3266_v18, %v3019_v39  ;;  %vm678_vm3 = vcmp.eq.s32.totalorder %v3261_v17, %v3019_v39 }
  0xd2   : > { %vm3280_vm1 = vmpackc.low %vm679_vm12, %vm675_vm15 }
  0xd3   : > { %v4959_v19 = vsel %vm3280_vm1, 4294967295, %v4958_v19  ;;  %2165 = vmatprep.subr.msk.bf16.mxu1 %vm3280_vm1, %v4834_v45  ;;  %vm3291_vm14 = vmpackc.low %vm678_vm3, %vm674_vm8 }
  0xd4   : > { %v4961_v20 = vsel %vm3291_vm14, 4294967295, %v4960_v20  ;;  %2167 = vmatpush1.bf16.msk.msra.mxu1 %vm3291_vm14, %v4834_v45  ;;  %v3298_v21 = vpop.permute.xlu1 %400  ;;  %v3300_v22 = vpop.permute.xlu0 %397  ;;  %vm3302_vm15 = vmpackc.low %vm697_vm11, %vm693_vm13 }
  0xd5   : > { %v4963_v23 = vsel %vm3302_vm15, 4294967295, %v4962_v23  ;;  %vm547_vm12 = vcmp.eq.s32.totalorder %v3300_v22, %v3026_v42  ;;  %vm551_vm3 = vcmp.eq.s32.totalorder %v3298_v21, %v3026_v42  ;;  %vm3310_vm8 = vmpackc.low %vm696_vm4, %vm692_vm6  ;;  %vm546_vm13 = vcmp.eq.s32.totalorder %v3300_v22, %v3019_v39 }
  0xd6   : > { %v4965_v24 = vsel %vm3310_vm8, 4294967295, %v4964_v24  ;;  %vm3314_vm1 = vmpackc.low %vm551_vm3, %vm547_vm12  ;;  %vm550_vm11 = vcmp.eq.s32.totalorder %v3298_v21, %v3019_v39  ;;  %vm685_vm12 = vcmp.eq.s32.totalorder %v3198_v8, %v3122_v57  ;;  %vm689_vm3 = vcmp.eq.s32.totalorder %v3193_v7, %v3122_v57 }
  0xd7   : > { %v4967_v25 = vsel %vm3314_vm1, 4294967295, %v4966_v25  ;;  %2101 = vmatprep.subr.msk.bf16.mxu0 %vm3314_vm1, %v4834_v45  ;;  %vm3325_vm14 = vmpackc.low %vm550_vm11, %vm546_vm13  ;;  %vm688_vm13 = vcmp.eq.s32.totalorder %v3193_v7, %v3125_v58  ;;  %vm684_vm11 = vcmp.eq.s32.totalorder %v3198_v8, %v3125_v58  ;;  %v4997_v7 = vmov 0 }
  0xd8   : > { %4968 = vst [vmem:[#allocation9_spill] sm:$0xff] %v4967_v25  ;;  %v4970_v26 = vsel %vm3325_vm14, 4294967295, %v4969_v26  ;;  %v3329_v27 = vpop.permute.xlu1 %490  ;;  %2103 = vmatpush1.bf16.msk.msra.mxu0 %vm3325_vm14, %v4834_v45  ;;  %v3334_v28 = vpop.permute.xlu0 %487  ;;  %v5001_v8 = vmov 0  ;;  %vm577_vm8 = vcmp.eq.s32.totalorder %v3095_v53, %v3122_v57  ;;  %v5052_v25 = vmov 0 }
  0xd9   : > { %4971 = vst [vmem:[#allocation10_spill] sm:$0xff] %v4970_v26  ;;  %vm667_vm4 = vcmp.eq.s32.totalorder %v3334_v28, %v3026_v42  ;;  %vm671_vm6 = vcmp.eq.s32.totalorder %v3329_v27, %v3026_v42  ;;  %vm666_vm1 = vcmp.eq.s32.totalorder %v3334_v28, %v3019_v39  ;;  %vm670_vm9 = vcmp.eq.s32.totalorder %v3329_v27, %v3019_v39 }
  0xda   : > { %vm3348_vm14 = vmpackc.low %vm671_vm6, %vm667_vm4 }
  0xdb   : > { %v4973_v29 = vsel %vm3348_vm14, 4294967295, %v4972_v29  ;;  %2169 = vmatprep.subr.msk.bf16.mxu1 %vm3348_vm14, %v4834_v45  ;;  %vm3359_vm7 = vmpackc.low %vm670_vm9, %vm666_vm1 }
  0xdc   : > { %v4975_v30 = vsel %vm3359_vm7, 4294967295, %v4974_v30  ;;  %2171 = vmatpush1.bf16.msk.msra.mxu1 %vm3359_vm7, %v4834_v45  ;;  %v3366_v31 = vpop.permute.xlu1 %394  ;;  %v3368_v32 = vpop.permute.xlu0 %391  ;;  %vm3370_vm4 = vmpackc.low %vm689_vm3, %vm685_vm12 }
  0xdd   : > { %4976 = vst [vmem:[#allocation11_spill] sm:$0xff] %v4975_v30  ;;  %v4978_v33 = vsel %vm3370_vm4, 4294967295, %v4977_v33  ;;  %vm539_vm6 = vcmp.eq.s32.totalorder %v3368_v32, %v3026_v42  ;;  %vm543_vm9 = vcmp.eq.s32.totalorder %v3366_v31, %v3026_v42  ;;  %vm3378_vm1 = vmpackc.low %vm688_vm13, %vm684_vm11  ;;  %vm538_vm12 = vcmp.eq.s32.totalorder %v3368_v32, %v3019_v39 }
  0xde   : > { %v4980_v34 = vsel %vm3378_vm1, 4294967295, %v4979_v34  ;;  %vm3382_vm14 = vmpackc.low %vm543_vm9, %vm539_vm6  ;;  %vm542_vm3 = vcmp.eq.s32.totalorder %v3366_v31, %v3019_v39  ;;  %vm677_vm9 = vcmp.eq.s32.totalorder %v3266_v18, %v3122_v57 }
  0xdf   : > { %v4982_v35 = vsel %vm3382_vm14, 4294967295, %v4981_v35  ;;  %2105 = vmatprep.subr.msk.bf16.mxu0 %vm3382_vm14, %v4834_v45  ;;  %vm3393_vm7 = vmpackc.low %vm542_vm3, %vm538_vm12  ;;  %vm681_vm12 = vcmp.eq.s32.totalorder %v3261_v17, %v3122_v57 }
  0xe0   : > { %4983 = vst [vmem:[#allocation12_spill] sm:$0xff] %v4982_v35  ;;  %v4985_v36 = vsel %vm3393_vm7, 4294967295, %v4984_v36  ;;  %v3397_v38 = vpop.permute.xlu1 %484  ;;  %2107 = vmatpush1.bf16.msk.msra.mxu0 %vm3393_vm7, %v4834_v45  ;;  %v3402_v40 = vpop.permute.xlu0 %481 }
  0xe1   : > { %4986 = vst [vmem:[#allocation13_spill] sm:$0xff] %v4985_v36  ;;  %vm659_vm11 = vcmp.eq.s32.totalorder %v3402_v40, %v3026_v42  ;;  %vm663_vm6 = vcmp.eq.s32.totalorder %v3397_v38, %v3026_v42  ;;  %vm658_vm13 = vcmp.eq.s32.totalorder %v3402_v40, %v3019_v39  ;;  %vm662_vm1 = vcmp.eq.s32.totalorder %v3397_v38, %v3019_v39 }
  0xe2   : > { %vm3418_vm14 = vmpackc.low %vm663_vm6, %vm659_vm11  ;;  %vm581_vm11 = vcmp.eq.s32.totalorder %v3023_v41, %v3122_v57  ;;  %vm4993_vm6 = vcmp.eq.s32.totalorder %v3028_v43, %v3122_v57  ;;  %vm664_vm5 = vcmp.eq.s32.totalorder %v3397_v38, %v3125_v58  ;;  %vm660_vm10 = vcmp.eq.s32.totalorder %v3402_v40, %v3125_v58 }
  0xe3   : > { %v4988_v4 = vsel %vm3418_vm14, 4294967295, %v4987_v4  ;;  %2173 = vmatprep.subr.msk.bf16.mxu1 %vm3418_vm14, %v4834_v45  ;;  %vm3429_vm4 = vmpackc.low %vm662_vm1, %vm658_vm13  ;;  %vm4999_vm14 = vcmp.eq.s32.totalorder %v3266_v18, %v3125_v58 }
  0xe4   : > { %4989 = vst [vmem:[#allocation14_spill] sm:$0xff] %v4988_v4  ;;  %v4991_v48 = vsel %vm3429_vm4, 4294967295, %v4990_v48  ;;  %2175 = vmatpush1.bf16.msk.msra.mxu1 %vm3429_vm4, %v4834_v45  ;;  %v3438_v49 = vpop.permute.xlu1 %388  ;;  %v3440_v59 = vpop.permute.xlu0 %385  ;;  %vm3445_vm3 = vmpackc.low %vm4993_vm6, %vm581_vm11  ;;  %vm5000_vm11 = vcmp.eq.s32.totalorder %v3261_v17, %v3125_v58  ;;  %v5006_v17 = vmov 0  ;;  %v5027_v4 = vmov 0 }
  0xe5   : > { %4992 = vst [vmem:[#allocation15_spill] sm:$0xff] %v4991_v48  ;;  %v4995_v60 = vsel %vm3445_vm3, 4294967295, %v4994_v60  ;;  %vm3449_vm1 = vmpackc.low %vm681_vm12, %vm677_vm9  ;;  %vm531_vm7 = vcmp.eq.s32.totalorder %v3440_v59, %v3026_v42  ;;  %vm535_vm4 = vcmp.eq.s32.totalorder %v3438_v49, %v3026_v42  ;;  %vm530_vm12 = vcmp.eq.s32.totalorder %v3440_v59, %v3019_v39  ;;  %v3538_v48 = vld [vmem:[%s4777_s3 + $0x8] ss:$12 sps:$4 sm:$0xff]  }
  0xe6   : > { %4996 = vst [vmem:[#allocation16_spill] sm:$0xff] %v4995_v60  ;;  %v4998_v7 = vsel %vm3449_vm1, 4294967295, %v4997_v7  ;;  %vm3465_vm6 = vmpackc.low %vm5000_vm11, %vm4999_vm14  ;;  %vm534_vm13 = vcmp.eq.s32.totalorder %v3438_v49, %v3019_v39  ;;  %vm573_vm1 = vcmp.eq.s32.totalorder %v3097_v54, %v3122_v57  ;;  %vm580_vm14 = vcmp.eq.s32.totalorder %v3023_v41, %v3125_v58 }
  0xe7   : > { %v5002_v8 = vsel %vm3465_vm6, 4294967295, %v5001_v8  ;;  %vm3469_vm9 = vmpackc.low %vm535_vm4, %vm531_vm7  ;;  %vm5009_vm4 = vcmp.eq.s32.totalorder %v3028_v43, %v3125_v58  ;;  %v5010_v41 = vmov 0  ;;  %vm673_vm6 = vcmp.eq.s32.totalorder %v3329_v27, %v3122_v57 }
  0xe8   : > { %v5004_v3 = vsel %vm3469_vm9, 4294967295, %v5003_v3  ;;  %2109 = vmatprep.subr.msk.bf16.mxu0 %vm3469_vm9, %v4834_v45  ;;  %vm3486_vm7 = vmpackc.low %vm534_vm13, %vm530_vm12  ;;  %v3490_v18 = vpop.permute.xlu1 %478  ;;  %v3495_v36 = vpop.permute.xlu0 %475  ;;  %v5016_v43 = vmov 0 }
  0xe9   : > { %5005 = vst [vmem:[#allocation17_spill] sm:$0xff] %v5004_v3  ;;  %v5007_v17 = vsel %vm3486_vm7, 4294967295, %v5006_v17  ;;  %2111 = vmatpush1.bf16.msk.msra.mxu0 %vm3486_vm7, %v4834_v45  ;;  %vm3500_vm11 = vmpackc.low %vm5009_vm4, %vm580_vm14  ;;  %vm651_vm13 = vcmp.eq.s32.totalorder %v3495_v36, %v3026_v42  ;;  %vm655_vm12 = vcmp.eq.s32.totalorder %v3490_v18, %v3026_v42  ;;  %v5013_v3 = vmov 0 }
  0xea   : > { %5008 = vst [vmem:[#allocation18_spill] sm:$0xff] %v5007_v17  ;;  %v5011_v41 = vsel %vm3500_vm11, 4294967295, %v5010_v41  ;;  %vm3508_vm9 = vmpackc.low %vm577_vm8, %vm573_vm1  ;;  %vm669_vm7 = vcmp.eq.s32.totalorder %v3334_v28, %v3122_v57  ;;  %vm668_vm4 = vcmp.eq.s32.totalorder %v3334_v28, %v3125_v58  ;;  %vm650_vm8 = vcmp.eq.s32.totalorder %v3495_v36, %v3019_v39 }
  0xeb   : > { %5012 = vst [vmem:[#allocation19_spill] sm:$0xff] %v5011_v41  ;;  %v5014_v3 = vsel %vm3508_vm9, 4294967295, %v5013_v3  ;;  %vm3520_vm15 = vmpackc.low %vm655_vm12, %vm651_vm13  ;;  %vm654_vm1 = vcmp.eq.s32.totalorder %v3490_v18, %v3019_v39  ;;  %v5019_v17 = vmov 0  ;;  %v3653_v41 = vld [vmem:[%s4777_s3 + $0x20] ss:$12 sps:$4 sm:$0xff]  }
  0xec   : > { %5015 = vst [vmem:[#allocation20_spill] sm:$0xff] %v5014_v3  ;;  %v5017_v43 = vsel %vm3520_vm15, 4294967295, %v5016_v43  ;;  %2177 = vmatprep.subr.msk.bf16.mxu1 %vm3520_vm15, %v4834_v45  ;;  %vm3531_vm2 = vmpackc.low %vm654_vm1, %vm650_vm8  ;;  %v3543_v35 = vpop.permute.xlu1 %382  ;;  %v3545_v26 = vpop.permute.xlu0 %379  ;;  %vm569_vm15 = vcmp.eq.s32.totalorder %v3162_v63, %v3122_v57  ;;  %v5047_v3 = vmov 0 }
  0xed   : > { %5018 = vst [vmem:[#allocation21_spill] sm:$0xff] %v5017_v43  ;;  %v5020_v17 = vsel %vm3531_vm2, 4294967295, %v5019_v17  ;;  %2179 = vmatpush1.bf16.msk.msra.mxu1 %vm3531_vm2, %v4834_v45  ;;  %vm3547_vm13 = vmpackc.low %vm673_vm6, %vm669_vm7  ;;  %v5022_v43 = vmov 0  ;;  %vm523_vm1 = vcmp.eq.s32.totalorder %v3545_v26, %v3026_v42  ;;  %vm527_vm14 = vcmp.eq.s32.totalorder %v3543_v35, %v3026_v42 }
  0xee   : > { %5021 = vst [vmem:[#allocation22_spill] sm:$0xff] %v5020_v17  ;;  %v5023_v43 = vsel %vm3547_vm13, 4294967295, %v5022_v43  ;;  %2181 = vmatprep.subr.msk.bf16.mxu1 %vm3445_vm3, %v4834_v45  ;;  %vm5024_vm6 = vcmp.eq.s32.totalorder %v3329_v27, %v3125_v58  ;;  %v5025_v17 = vmov 0  ;;  %vm3572_vm12 = vmpackc.low %vm527_vm14, %vm523_vm1  ;;  %vm522_vm8 = vcmp.eq.s32.totalorder %v3545_v26, %v3019_v39 }
  0xef   : > { %vm3568_vm7 = vmpackc.low %vm5024_vm6, %vm668_vm4  ;;  %v5028_v4 = vsel %vm3572_vm12, 4294967295, %v5027_v4  ;;  %vm526_vm3 = vcmp.eq.s32.totalorder %v3543_v35, %v3019_v39  ;;  %2113 = vmatprep.subr.msk.bf16.mxu0 %vm3572_vm12, %v4834_v45  ;;  %v5030_v27 = vmov 0  ;;  %vm5033_vm4 = vcmp.eq.s32.totalorder %v3097_v54, %v3125_v58 }
  0xf0   : > { %v5026_v17 = vsel %vm3568_vm7, 4294967295, %v5025_v17  ;;  %5029 = vst [vmem:[#allocation23_spill] sm:$0xff] %v5028_v4  ;;  %1328 = vmatmul.mubr.bf16.vlgmr.msra.gmra.mxu1 %v3538_v48  ;;  %vm3588_vm14 = vmpackc.low %vm526_vm3, %vm522_vm8  ;;  %v3595_v28 = vpop.permute.xlu1 %472  ;;  %v3600_v60 = vpop.permute.xlu0 %469  ;;  %vm5034_vm3 = vcmp.eq.s32.totalorder %v3095_v53, %v3125_v58  ;;  %v5035_v4 = vmov 0  ;;  %v5039_v53 = vmov 0 }
  0xf1   : > { %v5031_v27 = vsel %vm3588_vm14, 4294967295, %v5030_v27  ;;  %2183 = vmatpush1.bf16.msk.msra.mxu1 %vm3500_vm11, %v4834_v45  ;;  %2115 = vmatpush1.bf16.msk.msra.mxu0 %vm3588_vm14, %v4834_v45  ;;  %vm3608_vm8 = vmpackc.low %vm5034_vm3, %vm5033_vm4  ;;  %vm643_vm2 = vcmp.eq.s32.totalorder %v3600_v60, %v3026_v42  ;;  %vm647_vm14 = vcmp.eq.s32.totalorder %v3595_v28, %v3026_v42  ;;  %vm5038_vm4 = vcmp.eq.s32.totalorder %v3164_v0, %v3122_v57 }
  0xf2   : > { %5032 = vst [vmem:[#allocation24_spill] sm:$0xff] %v5031_v27  ;;  %v5036_v4 = vsel %vm3608_vm8, 4294967295, %v5035_v4  ;;  %2185 = vmatprep.subr.msk.bf16.mxu1 %vm3508_vm9, %v4834_v45  ;;  %vm3626_vm3 = vmpackc.low %vm569_vm15, %vm5038_vm4  ;;  %v5042_v54 = vmov 0  ;;  %vm642_vm6 = vcmp.eq.s32.totalorder %v3600_v60, %v3019_v39  ;;  %vm646_vm9 = vcmp.eq.s32.totalorder %v3595_v28, %v3019_v39 }
  0xf3   : > { %5037 = vst [vmem:[#allocation25_spill] sm:$0xff] %v5036_v4  ;;  %v5040_v53 = vsel %vm3626_vm3, 4294967295, %v5039_v53  ;;  %vm3630_vm1 = vmpackc.low %vm647_vm14, %vm643_vm2  ;;  %v5045_v45 = vmov 0   ;;  %v5046_v27 = vmov 1.0|1.0   ;;  %vm5050_vm15 = vcmp.eq.s32.totalorder %v3164_v0, %v3125_v58 }
  0xf4   : > { %5041 = vst [vmem:[#allocation26_spill] sm:$0xff] %v5040_v53  ;;  %v5043_v54 = vsel %vm3630_vm1, 4294967295, %v5042_v54  ;;  %1337 = vmatprep.mubr.bf16.mxu1 %v5045_v45  ;;  %2117 = vmatprep.subr.msk.bf16.mxu0 %vm3630_vm1, %v5046_v27  ;;  %vm3646_vm2 = vmpackc.low %vm646_vm9, %vm642_vm6  ;;  %v3658_v30 = vpop.permute.xlu1 %466  ;;  %vm5051_vm9 = vcmp.eq.s32.totalorder %v3162_v63, %v3125_v58  ;;  %v5057_v63 = vmov 0  ;;  %v5060_v0 = vmov 0 }
  0xf5   : > { %5044 = vst [vmem:[#allocation27_spill] sm:$0xff] %v5043_v54  ;;  %v5048_v3 = vsel %vm3646_vm2, 4294967295, %v5047_v3  ;;  %2187 = vmatpush1.bf16.msk.msra.mxu1 %vm3608_vm8, %v5046_v27  ;;  %2119 = vmatpush2.bf16.msk.msra.mxu0 %vm3646_vm2, %v5046_v27  ;;  %v3663_v54 = vpop.permute.xlu0 %463  ;;  %vm3671_vm14 = vmpackc.low %vm5051_vm9, %vm5050_vm15  ;;  %vm639_vm11 = vcmp.eq.s32.totalorder %v3658_v30, %v3026_v42  ;;  %vm5055_vm15 = vcmp.eq.s32.totalorder %v3232_v12, %v3122_v57 }
  0xf6   : > { %5049 = vst [vmem:[#allocation28_spill] sm:$0xff] %v5048_v3  ;;  %v5053_v25 = vsel %vm3671_vm14, 4294967295, %v5052_v25  ;;  %2189 = vmatprep.subr.msk.bf16.mxu1 %vm3626_vm3, %v5046_v27  ;;  %vm635_vm12 = vcmp.eq.s32.totalorder %v3663_v54, %v3026_v42  ;;  %vm5056_vm9 = vcmp.eq.s32.totalorder %v3230_v11, %v3122_v57  ;;  %vm634_vm2 = vcmp.eq.s32.totalorder %v3663_v54, %v3019_v39 }
  0xf7   : > { %5054 = vst [vmem:[#allocation29_spill] sm:$0xff] %v5053_v25  ;;  %vm3692_vm6 = vmpackc.low %vm5056_vm9, %vm5055_vm15  ;;  %vm638_vm3 = vcmp.eq.s32.totalorder %v3658_v30, %v3019_v39  ;;  %vm553_vm1 = vcmp.eq.s32.totalorder %v3298_v21, %v3122_v57  ;;  %v5063_v3 = vmov 0  ;;  %vm5143_vm13 = vcmp.eq.s32.totalorder %v3402_v40, %v3122_v57 }
  0xf8   : > { %v5058_v63 = vsel %vm3692_vm6, 4294967295, %v5057_v63  ;;  %vm3696_vm4 = vmpackc.low %vm639_vm11, %vm635_vm12  ;;  %1338 = vmatmul.mubr.bf16.gmra.mxu1 %v3653_v41  ;;  %v3719_v53 = vpop.permute.xlu1 %460  ;;  %vm5066_vm12 = vcmp.eq.s32.totalorder %v3232_v12, %v3125_v58  ;;  %v5075_v12 = vmov 0  ;;  %v5164_v40 = vmov 0 }
  0xf9   : > { %5059 = vst [vmem:[#allocation30_spill] sm:$0xff] %v5058_v63  ;;  %v5061_v0 = vsel %vm3696_vm4, 4294967295, %v5060_v0  ;;  %2121 = vmatprep.subr.msk.bf16.mxu0 %vm3696_vm4, %v5046_v27  ;;  %vm3711_vm11 = vmpackc.low %vm638_vm3, %vm634_vm2  ;;  %2191 = vmatpush1.bf16.msk.msra.mxu1 %vm3671_vm14, %v5046_v27  ;;  %v3724_v4 = vpop.permute.xlu0 %457  ;;  %vm5067_vm3 = vcmp.eq.s32.totalorder %v3230_v11, %v3125_v58  ;;  %v5072_v11 = vmov 0  ;;  %vm545_vm4 = vcmp.eq.s32.totalorder %v3366_v31, %v3122_v57 }
  0xfa   : > { %5062 = vst [vmem:[#allocation31_spill] sm:$0xff] %v5061_v0  ;;  %v5064_v3 = vsel %vm3711_vm11, 4294967295, %v5063_v3  ;;  %2123 = vmatpush2.bf16.msk.msra.mxu0 %vm3711_vm11, %v5046_v27  ;;  %vm3732_vm2 = vmpackc.low %vm5067_vm3, %vm5066_vm12  ;;  %v5068_v0 = vmov 0  ;;  %2193 = vmatprep.subr.msk.bf16.mxu1 %vm3692_vm6, %v5046_v27  ;;  %vm627_vm8 = vcmp.eq.s32.totalorder %v3724_v4, %v3026_v42  ;;  %vm631_vm11 = vcmp.eq.s32.totalorder %v3719_v53, %v3026_v42 }
  0xfb   : > { %5065 = vst [vmem:[#allocation32_spill] sm:$0xff] %v5064_v3  ;;  %v5069_v0 = vsel %vm3732_vm2, 4294967295, %v5068_v0  ;;  %vm5071_vm12 = vcmp.eq.s32.totalorder %v3300_v22, %v3122_v57  ;;  %vm3754_vm15 = vmpackc.low %vm631_vm11, %vm627_vm8  ;;  %vm626_vm9 = vcmp.eq.s32.totalorder %v3724_v4, %v3019_v39  ;;  %vm630_vm6 = vcmp.eq.s32.totalorder %v3719_v53, %v3019_v39  ;;  %1380 = vmatprep.mubr.bf16.mxu1 %v3016_v37 }
  0xfc   : > { %5070 = vst [vmem:[#allocation33_spill] sm:$0xff] %v5069_v0  ;;  %vm3750_vm3 = vmpackc.low %vm553_vm1, %vm5071_vm12  ;;  %v5076_v12 = vsel %vm3754_vm15, 4294967295, %v5075_v12  ;;  %2125 = vmatprep.subr.msk.bf16.mxu0 %vm3754_vm15, %v5046_v27  ;;  %v5077_v3 = vmov 0  ;;  %v3777_v63 = vpop.permute.xlu1 %454  ;;  %vm5080_vm1 = vcmp.eq.s32.totalorder %v3300_v22, %v3125_v58  ;;  %v5082_v37 = vmov 0 }
  0xfd   : > { %v5073_v11 = vsel %vm3750_vm3, 4294967295, %v5072_v11  ;;  %vm3770_vm8 = vmpackc.low %vm630_vm6, %vm626_vm9  ;;  %2195 = vmatpush1.bf16.msk.msra.mxu1 %vm3732_vm2, %v5046_v27  ;;  %v3782_v25 = vpop.permute.xlu0 %451  ;;  %vm5081_vm6 = vcmp.eq.s32.totalorder %v3298_v21, %v3125_v58  ;;  %v5086_v21 = vmov 0  ;;  %v5089_v22 = vmov 0 }
  0xfe   : > { %5074 = vst [vmem:[#allocation34_spill] sm:$0xff] %v5073_v11  ;;  %v5078_v3 = vsel %vm3770_vm8, 4294967295, %v5077_v3  ;;  %2127 = vmatpush2.bf16.msk.msra.mxu0 %vm3770_vm8, %v5046_v27  ;;  %vm3790_vm11 = vmpackc.low %vm5081_vm6, %vm5080_vm1  ;;  %2197 = vmatprep.subr.msk.bf16.mxu1 %vm3750_vm3, %v5046_v27  ;;  %vm619_vm14 = vcmp.eq.s32.totalorder %v3782_v25, %v3026_v42  ;;  %vm623_vm8 = vcmp.eq.s32.totalorder %v3777_v63, %v3026_v42 }
  0xff   : > { %5079 = vst [vmem:[#allocation35_spill] sm:$0xff] %v5078_v3  ;;  %v5083_v37 = vsel %vm3790_vm11, 4294967295, %v5082_v37  ;;  %vm5085_vm1 = vcmp.eq.s32.totalorder %v3368_v32, %v3122_v57  ;;  %vm3812_vm9 = vmpackc.low %vm623_vm8, %vm619_vm14  ;;  %vm618_vm12 = vcmp.eq.s32.totalorder %v3782_v25, %v3019_v39  ;;  %vm622_vm3 = vcmp.eq.s32.totalorder %v3777_v63, %v3019_v39 }
 0x100   : > { %5084 = vst [vmem:[#allocation36_spill] sm:$0xff] %v5083_v37  ;;  %vm3808_vm6 = vmpackc.low %vm545_vm4, %vm5085_vm1  ;;  %v5090_v22 = vsel %vm3812_vm9, 4294967295, %v5089_v22  ;;  %vm533_vm2 = vcmp.eq.s32.totalorder %v3440_v59, %v3122_v57  ;;  %vm537_vm15 = vcmp.eq.s32.totalorder %v3438_v49, %v3122_v57  ;;  %2129 = vmatprep.subr.msk.bf16.mxu0 %vm3812_vm9, %v5046_v27  ;;  %v5092_v3 = vmov 0  ;;  %v3834_v11 = vpop.permute.xlu1 %448 }
 0x101   : > { %v5087_v21 = vsel %vm3808_vm6, 4294967295, %v5086_v21  ;;  %5091 = vst [vmem:[#allocation38_spill] sm:$0xff] %v5090_v22  ;;  %vm3827_vm14 = vmpackc.low %vm622_vm3, %vm618_vm12  ;;  %2199 = vmatpush1.bf16.msk.msra.mxu1 %vm3790_vm11, %v5046_v27  ;;  %v3839_v0 = vpop.permute.xlu0 %445  ;;  %vm5095_vm4 = vcmp.eq.s32.totalorder %v3368_v32, %v3125_v58  ;;  %vm5096_vm3 = vcmp.eq.s32.totalorder %v3366_v31, %v3125_v58  ;;  %v5097_v22 = vmov 0 }
 0x102   : > { %5088 = vst [vmem:[#allocation37_spill] sm:$0xff] %v5087_v21  ;;  %v5093_v3 = vsel %vm3827_vm14, 4294967295, %v5092_v3  ;;  %2131 = vmatpush2.bf16.msk.msra.mxu0 %vm3827_vm14, %v5046_v27  ;;  %vm3847_vm8 = vmpackc.low %vm5096_vm3, %vm5095_vm4  ;;  %2201 = vmatprep.subr.msk.bf16.mxu1 %vm3808_vm6, %v5046_v27  ;;  %vm611_vm14 = vcmp.eq.s32.totalorder %v3839_v0, %v3026_v42  ;;  %vm615_vm11 = vcmp.eq.s32.totalorder %v3834_v11, %v3026_v42  ;;  %v5100_v31 = vmov 0 }
 0x103   : > { %5094 = vst [vmem:[#allocation39_spill] sm:$0xff] %v5093_v3  ;;  %v5098_v22 = vsel %vm3847_vm8, 4294967295, %v5097_v22  ;;  %vm3862_vm4 = vmpackc.low %vm537_vm15, %vm533_vm2  ;;  %v5103_v32 = vmov 0  ;;  %vm610_vm12 = vcmp.eq.s32.totalorder %v3839_v0, %v3019_v39  ;;  %vm614_vm1 = vcmp.eq.s32.totalorder %v3834_v11, %v3019_v39 }
 0x104   : > { %5099 = vst [vmem:[#allocation40_spill] sm:$0xff] %v5098_v22  ;;  %v5101_v31 = vsel %vm3862_vm4, 4294967295, %v5100_v31  ;;  %vm3866_vm3 = vmpackc.low %vm615_vm11, %vm611_vm14  ;;  %vm525_vm6 = vcmp.eq.s32.totalorder %v3545_v26, %v3122_v57  ;;  %vm529_vm9 = vcmp.eq.s32.totalorder %v3543_v35, %v3122_v57  ;;  %v5106_v3 = vmov 0  ;;  %v3888_v21 = vpop.permute.xlu1 %442 }
 0x105   : > { %5102 = vst [vmem:[#allocation41_spill] sm:$0xff] %v5101_v31  ;;  %v5104_v32 = vsel %vm3866_vm3, 4294967295, %v5103_v32  ;;  %2133 = vmatprep.subr.msk.bf16.mxu0 %vm3866_vm3, %v5046_v27  ;;  %vm3881_vm2 = vmpackc.low %vm614_vm1, %vm610_vm12  ;;  %2203 = vmatpush1.bf16.msk.msra.mxu1 %vm3847_vm8, %v5046_v27  ;;  %v3893_v37 = vpop.permute.xlu0 %439  ;;  %vm5109_vm15 = vcmp.eq.s32.totalorder %v3440_v59, %v3125_v58  ;;  %vm5110_vm11 = vcmp.eq.s32.totalorder %v3438_v49, %v3125_v58  ;;  %v5113_v49 = vmov 0 }
 0x106   : > { %5105 = vst [vmem:[#allocation42_spill] sm:$0xff] %v5104_v32  ;;  %v5107_v3 = vsel %vm3881_vm2, 4294967295, %v5106_v3  ;;  %2135 = vmatpush2.bf16.msk.msra.mxu0 %vm3881_vm2, %v5046_v27  ;;  %vm3901_vm14 = vmpackc.low %vm5110_vm11, %vm5109_vm15  ;;  %v5111_v32 = vmov 0  ;;  %2205 = vmatprep.subr.msk.bf16.mxu1 %vm3862_vm4, %v5046_v27  ;;  %vm603_vm2 = vcmp.eq.s32.totalorder %v3893_v37, %v3026_v42  ;;  %vm607_vm8 = vcmp.eq.s32.totalorder %v3888_v21, %v3026_v42 }
 0x107   : > { %5108 = vst [vmem:[#allocation43_spill] sm:$0xff] %v5107_v3  ;;  %v5112_v32 = vsel %vm3901_vm14, 4294967295, %v5111_v32  ;;  %vm3916_vm15 = vmpackc.low %vm529_vm9, %vm525_vm6  ;;  %v5116_v59 = vmov 0  ;;  %vm602_vm12 = vcmp.eq.s32.totalorder %v3893_v37, %v3019_v39  ;;  %vm606_vm1 = vcmp.eq.s32.totalorder %v3888_v21, %v3019_v39 }
 0x108   : > { %v5114_v49 = vsel %vm3916_vm15, 4294967295, %v5113_v49  ;;  %vm3920_vm11 = vmpackc.low %vm607_vm8, %vm603_vm2  ;;  %vm645_vm4 = vcmp.eq.s32.totalorder %v3600_v60, %v3122_v57  ;;  %vm649_vm3 = vcmp.eq.s32.totalorder %v3595_v28, %v3122_v57  ;;  %v5119_v3 = vmov 0  ;;  %v3942_v31 = vpop.permute.xlu1 %436 }
 0x109   : > { %5115 = vst [vmem:[#allocation44_spill] sm:$0xff] %v5114_v49  ;;  %v5117_v59 = vsel %vm3920_vm11, 4294967295, %v5116_v59  ;;  %2137 = vmatprep.subr.msk.bf16.mxu0 %vm3920_vm11, %v5046_v27  ;;  %vm3935_vm9 = vmpackc.low %vm606_vm1, %vm602_vm12  ;;  %2207 = vmatpush1.bf16.msk.msra.mxu1 %vm3901_vm14, %v5046_v27  ;;  %v3947_v22 = vpop.permute.xlu0 %433  ;;  %vm5122_vm6 = vcmp.eq.s32.totalorder %v3545_v26, %v3125_v58  ;;  %vm5123_vm8 = vcmp.eq.s32.totalorder %v3543_v35, %v3125_v58  ;;  %v5126_v26 = vmov 0 }
 0x10a   : > { %5118 = vst [vmem:[#allocation45_spill] sm:$0xff] %v5117_v59  ;;  %v5120_v3 = vsel %vm3935_vm9, 4294967295, %v5119_v3  ;;  %2139 = vmatpush2.bf16.msk.msra.mxu0 %vm3935_vm9, %v5046_v27  ;;  %vm3955_vm2 = vmpackc.low %vm5123_vm8, %vm5122_vm6  ;;  %v5124_v59 = vmov 0  ;;  %2209 = vmatprep.subr.msk.bf16.mxu1 %vm3916_vm15, %v5046_v27  ;;  %vm595_vm9 = vcmp.eq.s32.totalorder %v3947_v22, %v3026_v42  ;;  %vm599_vm14 = vcmp.eq.s32.totalorder %v3942_v31, %v3026_v42 }
 0x10b   : > { %5121 = vst [vmem:[#allocation46_spill] sm:$0xff] %v5120_v3  ;;  %v5125_v59 = vsel %vm3955_vm2, 4294967295, %v5124_v59  ;;  %vm3970_vm6 = vmpackc.low %vm649_vm3, %vm645_vm4  ;;  %v5128_v35 = vmov 0  ;;  %vm594_vm12 = vcmp.eq.s32.totalorder %v3947_v22, %v3019_v39  ;;  %vm598_vm1 = vcmp.eq.s32.totalorder %v3942_v31, %v3019_v39 }
 0x10c   : > { %v5127_v26 = vsel %vm3970_vm6, 4294967295, %v5126_v26  ;;  %vm3974_vm8 = vmpackc.low %vm599_vm14, %vm595_vm9  ;;  %vm641_vm11 = vcmp.eq.s32.totalorder %v3658_v30, %v3122_v57  ;;  %v5131_v3 = vmov 0  ;;  %vm665_vm14 = vcmp.eq.s32.totalorder %v3397_v38, %v3122_v57  ;;  %v4001_v49 = vpop.permute.xlu1 %430 }
 0x10d   : > { %v5129_v35 = vsel %vm3974_vm8, 4294967295, %v5128_v35  ;;  %2141 = vmatprep.subr.msk.bf16.mxu0 %vm3974_vm8, %v5046_v27  ;;  %vm3989_vm4 = vmpackc.low %vm598_vm1, %vm594_vm12  ;;  %vm640_vm9 = vcmp.eq.s32.totalorder %v3658_v30, %v3125_v58  ;;  %vm636_vm15 = vcmp.eq.s32.totalorder %v3663_v54, %v3125_v58  ;;  %2211 = vmatpush1.bf16.msk.msra.mxu1 %vm3955_vm2, %v5046_v27  ;;  %vm5134_vm12 = vcmp.eq.s32.totalorder %v3600_v60, %v3125_v58 }
 0x10e   : > { %5130 = vst [vmem:[#allocation47_spill] sm:$0xff] %v5129_v35  ;;  %v5132_v3 = vsel %vm3989_vm4, 4294967295, %v5131_v3  ;;  %2143 = vmatpush2.bf16.msk.msra.mxu0 %vm3989_vm4, %v5046_v27  ;;  %v4009_v35 = vpop.permute.xlu0 %427  ;;  %vm5135_vm1 = vcmp.eq.s32.totalorder %v3595_v28, %v3125_v58  ;;  %v5136_v30 = vmov 0  ;;  %vm591_vm8 = vcmp.eq.s32.totalorder %v4001_v49, %v3026_v42  ;;  %2213 = vmatprep.subr.msk.bf16.mxu1 %vm3970_vm6, %v5046_v27  ;;  %vm4042_vm6 = vmpackc.low %vm665_vm14, %vm5143_vm13 }
 0x10f   : > { %5133 = vst [vmem:[#allocation48_spill] sm:$0xff] %v5132_v3  ;;  %vm4017_vm3 = vmpackc.low %vm5135_vm1, %vm5134_vm12  ;;  %vm5139_vm4 = vcmp.eq.s32.totalorder %v3663_v54, %v3122_v57  ;;  %v5140_v3 = vmov 0  ;;  %vm590_vm12 = vcmp.eq.s32.totalorder %v4001_v49, %v3019_v39  ;;  %vm586_vm1 = vcmp.eq.s32.totalorder %v4009_v35, %v3019_v39  ;;  %v4078_v54 = vld [vmem:[%s4777_s3] ss:$12 sps:$4 sm:$0xff]  }
 0x110   : > { %v5137_v30 = vsel %vm4017_vm3, 4294967295, %v5136_v30  ;;  %vm4029_vm2 = vmpackc.low %vm641_vm11, %vm5139_vm4  ;;  %vm587_vm7 = vcmp.eq.s32.totalorder %v4009_v35, %v3026_v42  ;;  %v5146_v28 = vmov 0  ;;  %vm629_vm4 = vcmp.eq.s32.totalorder %v3724_v4, %v3122_v57  ;;  %v5302_v39 = vld [vmem:[#allocation8_spill] sm:$0xff] }
 0x111   : > { %5138 = vst [vmem:[#allocation49_spill] sm:$0xff] %v5137_v30  ;;  %v5141_v3 = vsel %vm4029_vm2, 4294967295, %v5140_v3  ;;  %vm4046_vm11 = vmpackc.low %vm640_vm9, %vm636_vm15  ;;  %vm633_vm0 = vcmp.eq.s32.totalorder %v3719_v53, %v3122_v57  ;;  %2215 = vmatpush2.bf16.msk.msra.mxu1 %vm4017_vm3, %v5046_v27  ;;  %v5150_v42 = vmov 0  ;;  %vm652_vm9 = vcmp.eq.s32.totalorder %v3495_v36, %v3125_v58  ;;  %v4101_v30 = vld [vmem:[%s4777_s3 + $0x1c] ss:$12 sps:$4 sm:$0xff]  }
 0x112   : > { %5142 = vst [vmem:[#allocation50_spill] sm:$0xff] %v5141_v3  ;;  %v5147_v28 = vsel %vm4046_vm11, 4294967295, %v5146_v28  ;;  %vm4058_vm13 = vmpackc.low %vm591_vm8, %vm587_vm7  ;;  %2217 = vmatprep.subr.msk.bf16.mxu1 %vm4029_vm2, %v5046_v27  ;;  %vm653_vm7 = vcmp.eq.s32.totalorder %v3495_v36, %v3122_v57  ;;  %vm657_vm8 = vcmp.eq.s32.totalorder %v3490_v18, %v3122_v57  ;;  %v5152_v3 = vmov 0 }
 0x113   : > { %2145 = vmatprep.subr.msk.bf16.mxu0 %vm4058_vm13, %v5046_v27  ;;  %vm4068_vm15 = vmpackc.low %vm590_vm12, %vm586_vm1  ;;  %vm5154_vm1 = vnez %v4938_v1  ;;  %v5157_v1 = vmov 0  ;;  %v5160_v38 = vmov 0 }
 0x114   : > { %v5151_v42 = vsel %vm4068_vm15, 4294967295, %v5150_v42  ;;  %2147 = vmatpush2.bf16.msk.msra.mxu0 %vm4068_vm15, %v5046_v27  ;;  %vm4094_vm12 = vmpackc.low %vm633_vm0, %vm629_vm4  ;;  %vm632_vm0 = vcmp.eq.s32.totalorder %v3719_v53, %v3125_v58  ;;  %vm628_vm4 = vcmp.eq.s32.totalorder %v3724_v4, %v3125_v58  ;;  %vm5159_vm15 = vcmp.eq.s32.totalorder %v3490_v18, %v3125_v58 }
 0x115   : > { %v5153_v3 = vsel %vm4094_vm12, 4294967295, %v5152_v3  ;;  %2245 = vmatprep.subr.msk.bf16.mxu0 %vm5154_vm1, %v5046_v27  ;;  %vm4112_vm14 = vmpackc.low %vm664_vm5, %vm660_vm10  ;;  %2219 = vmatpush2.bf16.msk.msra.mxu1 %vm4046_vm11, %v5046_v27  ;;  %vm621_vm5 = vcmp.eq.s32.totalorder %v3782_v25, %v3122_v57  ;;  %vm625_vm10 = vcmp.eq.s32.totalorder %v3777_v63, %v3122_v57  ;;  %v5166_v4 = vmov 0 }
 0x116   : > { %vm4123_vm1 = vmpackc.low %vm657_vm8, %vm653_vm7  ;;  %2221 = vmatprep.subr.msk.bf16.mxu1 %vm4094_vm12, %v5046_v27  ;;  %vm5162_vm7 = vnez %v4941_v2  ;;  %vm5163_vm8 = vnez %v4951_v13  ;;  %v5170_v18 = vmov 0  ;;  %v5172_v53 = vmov 0 }
 0x117   : > { %v5158_v1 = vsel %vm4123_vm1, 4294967295, %v5157_v1  ;;  %1275 = vmatmul.mubr.bf16.vlgmr.msra.gmra.mxu0 %v4078_v54  ;;  %vm4138_vm11 = vmpackc.low %vm5159_vm15, %vm652_vm9  ;;  %vm624_vm15 = vcmp.eq.s32.totalorder %v3777_v63, %v3125_v58  ;;  %vm620_vm9 = vcmp.eq.s32.totalorder %v3782_v25, %v3125_v58  ;;  %v2566_v25 = vld [vmem:[%s4777_s3 + $0x18] ss:$12 sps:$4 sm:$0xff]   ;;  %v5176_v63 = vmov 0 }
 0x118   : > { %v5161_v38 = vsel %vm4138_vm11, 4294967295, %v5160_v38  ;;  %2247 = vmatpush1.bf16.msk.msra.mxu0 %vm5162_vm7, %v5046_v27  ;;  %1284 = vmatprep.mubr.bf16.mxu0 %v4101_v30  ;;  %vm4149_vm12 = vmpackc.low %vm632_vm0, %vm628_vm4  ;;  %vm613_vm0 = vcmp.eq.s32.totalorder %v3839_v0, %v3122_v57  ;;  %vm617_vm4 = vcmp.eq.s32.totalorder %v3834_v11, %v3122_v57 }
 0x119   : > { %2249 = vmatprep.subr.msk.bf16.mxu0 %vm5163_vm8, %v5046_v27  ;;  %v5165_v40 = vsel %vm4149_vm12, 4294967295, %v5164_v40  ;;  %2223 = vmatpush2.bf16.msk.msra.mxu1 %vm4149_vm12, %v5046_v27  ;;  %vm4160_vm7 = vmpackc.low %vm625_vm10, %vm621_vm5  ;;  %vm5168_vm5 = vnez %v4953_v14  ;;  %vm5169_vm10 = vnez %v4963_v23  ;;  %vm612_vm8 = vcmp.eq.s32.totalorder %v3839_v0, %v3125_v58 }
 0x11a   : > { %v5167_v4 = vsel %vm4160_vm7, 4294967295, %v5166_v4  ;;  %2225 = vmatprep.subr.msk.bf16.mxu1 %vm4160_vm7, %v5046_v27  ;;  %vm4180_vm12 = vmpackc.low %vm624_vm15, %vm620_vm9  ;;  %vm616_vm7 = vcmp.eq.s32.totalorder %v3834_v11, %v3125_v58  ;;  %vm605_vm15 = vcmp.eq.s32.totalorder %v3893_v37, %v3122_v57  ;;  %vm609_vm9 = vcmp.eq.s32.totalorder %v3888_v21, %v3122_v57 }
 0x11b   : > { %v5171_v18 = vsel %vm4180_vm12, 4294967295, %v5170_v18  ;;  %vm4191_vm2 = vmpackc.low %vm617_vm4, %vm613_vm0  ;;  %vm5175_vm0 = vnez %v4978_v33  ;;  %v5178_v0 = vmov 0  ;;  %v5182_v11 = vmov 0 }
 0x11c   : > { %2251 = vmatpush1.bf16.msk.msra.mxu0 %vm5168_vm5, %v5046_v27  ;;  %v5173_v53 = vsel %vm4191_vm2, 4294967295, %v5172_v53  ;;  %vm4209_vm4 = vmpackc.low %vm616_vm7, %vm612_vm8  ;;  %vm597_vm7 = vcmp.eq.s32.totalorder %v3947_v22, %v3122_v57  ;;  %vm601_vm8 = vcmp.eq.s32.totalorder %v3942_v31, %v3122_v57 }
 0x11d   : > { %2253 = vmatprep.subr.msk.bf16.mxu0 %vm5169_vm10, %v5046_v27  ;;  %2227 = vmatpush2.bf16.msk.msra.mxu1 %vm4180_vm12, %v5046_v27  ;;  %vm5174_vm10 = vnez %v4965_v24  ;;  %v5177_v63 = vsel %vm4209_vm4, 4294967295, %v5176_v63  ;;  %vm604_vm12 = vcmp.eq.s32.totalorder %v3893_v37, %v3125_v58  ;;  %vm4248_vm5 = vmpackc.low %vm601_vm8, %vm597_vm7  ;;  %v5184_v37 = vmov 0 }
 0x11e   : > { %2229 = vmatprep.subr.msk.bf16.mxu1 %vm4191_vm2, %v5046_v27  ;;  %vm608_vm2 = vcmp.eq.s32.totalorder %v3888_v21, %v3125_v58  ;;  %v5185_v37 = vsel %vm4248_vm5, 4294967295, %v5184_v37  ;;  %vm5187_vm7 = vnez %v5023_v43 }
 0x11f   : > { %1285 = vmatmul.mubr.bf16.gmra.mxu0 %v2566_v25 }
 0x120   : > { %2255 = vmatpush1.bf16.msk.msra.mxu0 %vm5174_vm10, %v5046_v27  ;;  %1433 = vmatprep.mubr.bf16.mxu0 %v5045_v45  ;;  %vm4220_vm10 = vmpackc.low %vm609_vm9, %vm605_vm15  ;;  %vm5181_vm15 = vnez %v4998_v7 }
 0x121   : > { %2257 = vmatprep.subr.msk.bf16.mxu0 %vm5175_vm0, %v5046_v27  ;;  %2231 = vmatpush2.bf16.msk.msra.mxu1 %vm4209_vm4, %v5046_v27  ;;  %v5179_v0 = vsel %vm4220_vm10, 4294967295, %v5178_v0  ;;  %vm5180_vm0 = vnez %v4980_v34  ;;  %vm4237_vm9 = vmpackc.low %vm608_vm2, %vm604_vm12  ;;  %vm596_vm4 = vcmp.eq.s32.totalorder %v3947_v22, %v3125_v58  ;;  %vm593_vm2 = vcmp.eq.s32.totalorder %v4001_v49, %v3122_v57 }
 0x122   : > { %2233 = vmatprep.subr.msk.bf16.mxu1 %vm4220_vm10, %v5046_v27  ;;  %v5183_v11 = vsel %vm4237_vm9, 4294967295, %v5182_v11  ;;  %vm600_vm10 = vcmp.eq.s32.totalorder %v3942_v31, %v3125_v58  ;;  %vm589_vm12 = vcmp.eq.s32.totalorder %v4009_v35, %v3122_v57  ;;  %v5252_v31 = vld [vmem:[#allocation28_spill] sm:$0xff] }
 0x123   : > { %vm4265_vm8 = vmpackc.low %vm600_vm10, %vm596_vm4  ;;  %vm5192_vm10 = vnez %v5026_v17 }
 0x124   : > { %2259 = vmatpush1.bf16.msk.msra.mxu0 %vm5180_vm0, %v5046_v27  ;;  %vm588_vm0 = vcmp.eq.s32.totalorder %v4009_v35, %v3125_v58  ;;  %v5256_v35 = vld [vmem:[#allocation29_spill] sm:$0xff] }
 0x125   : > { %2261 = vmatprep.subr.msk.bf16.mxu0 %vm5181_vm15, %v5046_v27  ;;  %2235 = vmatpush2.bf16.msk.msra.mxu1 %vm4237_vm9, %v5046_v27  ;;  %vm5186_vm15 = vnez %v5002_v8  ;;  %vm592_vm9 = vcmp.eq.s32.totalorder %v4001_v49, %v3125_v58  ;;  %v5228_v58 = vld [vmem:[#allocation13_spill] sm:$0xff]  ;;  %v5254_v49 = vld [vmem:[#allocation31_spill] sm:$0xff] }
 0x126   : > { %2237 = vmatprep.subr.msk.bf16.mxu1 %vm4248_vm5, %v5046_v27  ;;  %vm4276_vm5 = vmpackc.low %vm593_vm2, %vm589_vm12  ;;  %vm5195_vm2 = vnez %v4920_v46  ;;  %vm5198_vm12 = vnez %v4918_v44  ;;  %v2571_v44 = vld [vmem:[%s4776_s2 + $0x4] ss:$12 sps:$4 sm:$0xff]   ;;  %v5214_v46 = vld [vmem:[#allocation9_spill] sm:$0xff] }
 0x127   : > { %vm4286_vm4 = vmpackc.low %vm592_vm9, %vm588_vm0  ;;  %vm5196_vm0 = vnez %v4922_v47  ;;  %vm5197_vm9 = vnez %v4926_v51  ;;  %v5216_v47 = vld [vmem:[#allocation11_spill] sm:$0xff]  ;;  %v5220_v51 = vld [vmem:[#allocation10_spill] sm:$0xff] }
 0x128   : > { %2263 = vmatpush1.bf16.msk.msra.mxu0 %vm5186_vm15, %v5046_v27 }
 0x129   : > { %2265 = vmatprep.subr.msk.bf16.mxu0 %vm5187_vm7, %v5046_v27  ;;  %2239 = vmatpush2.bf16.msk.msra.mxu1 %vm4265_vm8, %v5046_v27 }
 0x12a   : > { %2241 = vmatprep.subr.msk.bf16.mxu1 %vm4276_vm5, %v5046_v27 }
 0x12c   : > { %2267 = vmatpush1.bf16.msk.msra.mxu0 %vm5192_vm10, %v5046_v27 }
 0x12d   : > { %2269 = vmatprep.subr.msk.bf16.mxu0 %vm4042_vm6, %v5046_v27  ;;  %2243 = vmatpush2.bf16.msk.msra.mxu1 %vm4286_vm4, %v5046_v27 }
 0x12e   : > { %2347 = vmatprep.subr.msk.bf16.mxu1 %vm5195_vm2, %v5046_v27  ;;  %vm5199_vm2 = vnez %v4928_v52  ;;  %v5222_v52 = vld [vmem:[#allocation12_spill] sm:$0xff] }
 0x130   : > { %2271 = vmatpush1.bf16.msk.msra.mxu0 %vm4112_vm14, %v5046_v27  ;;  %1381 = vmatmul.mubr.bf16.vlgmr.msra.gmra.mxu1 %v4078_v54  ;;  %v5260_v54 = vld [vmem:[#allocation32_spill] sm:$0xff] }
 0x131   : > { %2273 = vmatprep.subr.msk.bf16.mxu0 %vm4123_vm1, %v5046_v27  ;;  %2349 = vmatpush1.bf16.msk.msra.mxu1 %vm5196_vm0, %v5046_v27  ;;  %vm5200_vm0 = vnez %v4934_v61  ;;  %vm5217_vm1 = vnez %v5216_v47  ;;  %v5230_v61 = vld [vmem:[#allocation17_spill] sm:$0xff]  ;;  %v5269_v47 = vld [vmem:[#allocation38_spill] sm:$0xff] }
 0x132   : > { %1390 = vmatprep.mubr.bf16.mxu1 %v4101_v30  ;;  %2351 = vmatprep.subr.msk.bf16.mxu1 %vm5197_vm9, %v5046_v27  ;;  %vm5201_vm9 = vnez %v4924_v50  ;;  %v5218_v50 = vld [vmem:[#allocation14_spill] sm:$0xff] }
 0x133   : > { %v5258_v30 = vld [vmem:[#allocation30_spill] sm:$0xff] }
 0x134   : > { %2275 = vmatpush1.bf16.msk.msra.mxu0 %vm4138_vm11, %v5046_v27  ;;  %vm5202_vm11 = vnez %v4930_v55  ;;  %v5224_v55 = vld [vmem:[#allocation15_spill] sm:$0xff] }
 0x135   : > { %2283 = vmatprep.subr.msk.bf16.mxu0 %vm5198_vm12, %v5046_v27  ;;  %2353 = vmatpush1.bf16.msk.msra.mxu1 %vm5199_vm2, %v5046_v27  ;;  %vm5203_vm12 = vnez %v4936_v62  ;;  %vm5204_vm2 = vnez %v4947_v9  ;;  %v4401_v62 = vld [vmem:[%s4776_s2 + $0x8] ss:$12 sps:$4 sm:$0xff]  }
 0x136   : > { %2355 = vmatprep.subr.msk.bf16.mxu1 %vm5200_vm0, %v5046_v27  ;;  %vm5205_vm0 = vnez %v4932_v56  ;;  %v5226_v56 = vld [vmem:[#allocation21_spill] sm:$0xff]  ;;  %v5236_v9 = vld [vmem:[#allocation18_spill] sm:$0xff] }
 0x137   : > { %1434 = vmatmul.mubr.bf16.vlgmr.msra.gmra.mxu0 %v3538_v48  ;;  %v5248_v48 = vld [vmem:[#allocation25_spill] sm:$0xff] }
 0x138   : > { %2285 = vmatpush1.bf16.msk.msra.mxu0 %vm5201_vm9, %v5046_v27  ;;  %1443 = vmatprep.mubr.bf16.mxu0 %v5045_v45  ;;  %vm5207_vm9 = vnez %v4949_v10  ;;  %v5238_v10 = vld [vmem:[#allocation23_spill] sm:$0xff] }
 0x139   : > { %2287 = vmatprep.subr.msk.bf16.mxu0 %vm5202_vm11, %v5046_v27  ;;  %1391 = vmatmul.mubr.bf16.gmra.mxu1 %v2566_v25  ;;  %vm5206_vm11 = vnez %v4943_v5  ;;  %v5232_v5 = vld [vmem:[#allocation22_spill] sm:$0xff]  ;;  %v5263_v25 = vld [vmem:[#allocation33_spill] sm:$0xff] }
 0x13a   : > { %2357 = vmatpush1.bf16.msk.msra.mxu1 %vm5203_vm12, %v5046_v27  ;;  %1571 = vmatprep.mubr.bf16.mxu1 %v5045_v45  ;;  %vm5208_vm12 = vnez %v4959_v19  ;;  %v5244_v19 = vld [vmem:[#allocation24_spill] sm:$0xff] }
 0x13b   : > { %2359 = vmatprep.subr.msk.bf16.mxu1 %vm5204_vm2, %v5046_v27  ;;  %vm5209_vm2 = vnez %v4945_v6  ;;  %v5234_v6 = vld [vmem:[#allocation16_spill] sm:$0xff] }
 0x13c   : > { %2289 = vmatpush1.bf16.msk.msra.mxu0 %vm5205_vm0, %v5046_v27  ;;  %vm5210_vm0 = vnez %v4955_v15  ;;  %v5240_v15 = vld [vmem:[#allocation19_spill] sm:$0xff] }
 0x13d   : > { %2291 = vmatprep.subr.msk.bf16.mxu0 %vm5206_vm11, %v5046_v27  ;;  %vm5211_vm11 = vnez %v4961_v20  ;;  %v5246_v20 = vld [vmem:[#allocation27_spill] sm:$0xff] }
 0x13e   : > { %2361 = vmatpush1.bf16.msk.msra.mxu1 %vm5207_vm9, %v5046_v27  ;;  %vm5212_vm9 = vnez %v4973_v29  ;;  %v4432_v29 = vld [vmem:[%s4776_s2 + $0x20] ss:$12 sps:$4 sm:$0xff]  }
 0x13f   : > { %2363 = vmatprep.subr.msk.bf16.mxu1 %vm5208_vm12, %v5046_v27  ;;  %1444 = vmatmul.mubr.bf16.gmra.mxu0 %v3653_v41  ;;  %vm5213_vm12 = vnez %v4957_v16  ;;  %v5242_v16 = vld [vmem:[#allocation20_spill] sm:$0xff]  ;;  %v5250_v41 = vld [vmem:[#allocation26_spill] sm:$0xff] }
 0x140   : > { %2293 = vmatpush1.bf16.msk.msra.mxu0 %vm5209_vm2, %v5046_v27  ;;  %1518 = vmatprep.mubr.bf16.mxu0 %v2571_v44  ;;  %vm5215_vm2 = vnez %v5214_v46  ;;  %v5265_v46 = vld [vmem:[#allocation34_spill] sm:$0xff] }
 0x141   : > { %2295 = vmatprep.subr.msk.bf16.mxu0 %vm5210_vm0, %v5046_v27  ;;  %vm5219_vm0 = vnez %v5218_v50  ;;  %v5271_v50 = vld [vmem:[#allocation36_spill] sm:$0xff] }
 0x142   : > { %2365 = vmatpush1.bf16.msk.msra.mxu1 %vm5211_vm11, %v5046_v27  ;;  %vm5221_vm11 = vnez %v5220_v51  ;;  %v5275_v51 = vld [vmem:[#allocation39_spill] sm:$0xff] }
 0x143   : > { %2367 = vmatprep.subr.msk.bf16.mxu1 %vm5212_vm9, %v5046_v27  ;;  %vm5223_vm9 = vnez %v5222_v52  ;;  %v5277_v52 = vld [vmem:[#allocation42_spill] sm:$0xff] }
 0x144   : > { %2297 = vmatpush1.bf16.msk.msra.mxu0 %vm5213_vm12, %v5046_v27  ;;  %vm5225_vm12 = vnez %v5224_v55  ;;  %v5279_v55 = vld [vmem:[#allocation40_spill] sm:$0xff] }
 0x145   : > { %2299 = vmatprep.subr.msk.bf16.mxu0 %vm5215_vm2, %v5046_v27  ;;  %vm5227_vm2 = vnez %v5226_v56  ;;  %v5281_v56 = vld [vmem:[#allocation41_spill] sm:$0xff] }
 0x146   : > { %2369 = vmatpush1.bf16.msk.msra.mxu1 %vm5217_vm1, %v5046_v27  ;;  %vm5229_vm1 = vnez %v5228_v58  ;;  %v5283_v58 = vld [vmem:[#allocation43_spill] sm:$0xff] }
 0x147   : > { %2371 = vmatprep.subr.msk.bf16.mxu1 %vm5219_vm0, %v5046_v27  ;;  %vm5231_vm0 = vnez %v5230_v61  ;;  %v5285_v61 = vld [vmem:[#allocation45_spill] sm:$0xff] }
 0x148   : > { %2301 = vmatpush1.bf16.msk.msra.mxu0 %vm5221_vm11, %v5046_v27  ;;  %vm5233_vm11 = vnez %v5232_v5  ;;  %v5288_v5 = vld [vmem:[#allocation44_spill] sm:$0xff] }
 0x149   : > { %2303 = vmatprep.subr.msk.bf16.mxu0 %vm5223_vm9, %v5046_v27  ;;  %vm5235_vm9 = vnez %v5234_v6  ;;  %v5290_v6 = vld [vmem:[#allocation46_spill] sm:$0xff] }
 0x14a   : > { %2373 = vmatpush1.bf16.msk.msra.mxu1 %vm5225_vm12, %v5046_v27  ;;  %vm5237_vm12 = vnez %v5236_v9  ;;  %v5292_v9 = vld [vmem:[#allocation47_spill] sm:$0xff] }
 0x14b   : > { %2375 = vmatprep.subr.msk.bf16.mxu1 %vm5227_vm2, %v5046_v27  ;;  %vm5239_vm2 = vnez %v5238_v10 }
 0x14c   : > { %2305 = vmatpush1.bf16.msk.msra.mxu0 %vm5229_vm1, %v5046_v27  ;;  %vm5241_vm1 = vnez %v5240_v15  ;;  %v5299_v15 = vld [vmem:[#allocation50_spill] sm:$0xff] }
 0x14d   : > { %2307 = vmatprep.subr.msk.bf16.mxu0 %vm5231_vm0, %v5046_v27  ;;  %vm5243_vm0 = vnez %v5242_v16 }
 0x14e   : > { %2377 = vmatpush1.bf16.msk.msra.mxu1 %vm5233_vm11, %v5046_v27  ;;  %vm5245_vm11 = vnez %v5244_v19 }
 0x14f   : > { %2379 = vmatprep.subr.msk.bf16.mxu1 %vm5235_vm9, %v5046_v27  ;;  %vm5247_vm9 = vnez %v5246_v20 }
 0x150   : > { %2309 = vmatpush1.bf16.msk.msra.mxu0 %vm5237_vm12, %v5046_v27  ;;  %vm5249_vm12 = vnez %v5248_v48 }
 0x151   : > { %2311 = vmatprep.subr.msk.bf16.mxu0 %vm5239_vm2, %v5046_v27  ;;  %1572 = vmatmul.mubr.bf16.vlgmr.msra.gmra.mxu1 %v4401_v62  ;;  %vm5251_vm2 = vnez %v5250_v41 }
 0x152   : > { %2381 = vmatpush1.bf16.msk.msra.mxu1 %vm5241_vm1, %v5046_v27  ;;  %1581 = vmatprep.mubr.bf16.mxu1 %v5045_v45  ;;  %vm5253_vm1 = vnez %v5252_v31 }
 0x153   : > { %2383 = vmatprep.subr.msk.bf16.mxu1 %vm5243_vm0, %v5046_v27  ;;  %vm5255_vm0 = vnez %v5254_v49 }
 0x154   : > { %2313 = vmatpush1.bf16.msk.msra.mxu0 %vm5245_vm11, %v5046_v27  ;;  %vm5257_vm11 = vnez %v5256_v35 }
 0x155   : > { %2315 = vmatprep.subr.msk.bf16.mxu0 %vm5247_vm9, %v5046_v27  ;;  %vm5259_vm9 = vnez %v5258_v30  ;;  %v1698_v30 = vld [vmem:[%s2796_s17] sm:$0xff] }
 0x156   : > { %2385 = vmatpush1.bf16.msk.msra.mxu1 %vm5249_vm12, %v5046_v27  ;;  %vm5261_vm12 = vnez %v5260_v54 }
 0x157   : > { %2387 = vmatprep.subr.msk.bf16.mxu1 %vm5251_vm2, %v5046_v27  ;;  %vm5262_vm2 = vnez %v5076_v12  ;;  %v5273_v12 = vld [vmem:[#allocation37_spill] sm:$0xff] }
 0x158   : > { %2317 = vmatpush2.bf16.msk.msra.mxu0 %vm5253_vm1, %v5046_v27  ;;  %vm5264_vm1 = vnez %v5263_v25 }
 0x159   : > { %2319 = vmatprep.subr.msk.bf16.mxu0 %vm5255_vm0, %v5046_v27  ;;  %1582 = vmatmul.mubr.bf16.gmra.mxu1 %v4432_v29  ;;  %vm5266_vm0 = vnez %v5265_v46 }
 0x15a   : > { %2389 = vmatpush1.bf16.msk.msra.mxu1 %vm5257_vm11, %v5046_v27  ;;  %1624 = vmatprep.mubr.bf16.mxu1 %v2571_v44  ;;  %v5267_v44 = vld [vmem:[#allocation35_spill] sm:$0xff] }
 0x15b   : > { %2391 = vmatprep.subr.msk.bf16.mxu1 %vm5259_vm9, %v5046_v27  ;;  %vm5268_vm11 = vnez %v5267_v44  ;;  %vm5270_vm9 = vnez %v5269_v47 }
 0x15c   : > { %2321 = vmatpush2.bf16.msk.msra.mxu0 %vm5261_vm12, %v5046_v27  ;;  %vm5272_vm12 = vnez %v5271_v50  ;;  %v1699_v50 = vld [vmem:[%s2796_s17 + $0x8] sm:$0xff] }
 0x15d   : > { %2323 = vmatprep.subr.msk.bf16.mxu0 %vm5262_vm2, %v5046_v27  ;;  %vm5274_vm2 = vnez %v5273_v12 }
 0x15e   : > { %2393 = vmatpush1.bf16.msk.msra.mxu1 %vm5264_vm1, %v5046_v27  ;;  %vm5276_vm1 = vnez %v5275_v51 }
 0x15f   : > { %2395 = vmatprep.subr.msk.bf16.mxu1 %vm5266_vm0, %v5046_v27  ;;  %vm5278_vm0 = vnez %v5277_v52 }
 0x160   : > { %2325 = vmatpush2.bf16.msk.msra.mxu0 %vm5268_vm11, %v5046_v27  ;;  %vm5280_vm11 = vnez %v5279_v55 }
 0x161   : > { %2327 = vmatprep.subr.msk.bf16.mxu0 %vm5270_vm9, %v5046_v27  ;;  %vm5282_vm9 = vnez %v5281_v56 }
 0x162   : > { %2397 = vmatpush1.bf16.msk.msra.mxu1 %vm5272_vm12, %v5046_v27  ;;  %vm5284_vm12 = vnez %v5283_v58  ;;  %v1702_v58 = vld [vmem:[%s2796_s17 + $0x20] sm:$0xff] }
 0x163   : > { %2399 = vmatprep.subr.msk.bf16.mxu1 %vm5274_vm2, %v5046_v27  ;;  %vm5286_vm2 = vnez %v5285_v61 }
 0x164   : > { %2329 = vmatpush2.bf16.msk.msra.mxu0 %vm5276_vm1, %v5046_v27  ;;  %vm5287_vm1 = vnez %v5112_v32  ;;  %v5296_v32 = vld [vmem:[#allocation48_spill] sm:$0xff] }
 0x165   : > { %2331 = vmatprep.subr.msk.bf16.mxu0 %vm5278_vm0, %v5046_v27  ;;  %vm5289_vm0 = vnez %v5288_v5 }
 0x166   : > { %2401 = vmatpush1.bf16.msk.msra.mxu1 %vm5280_vm11, %v5046_v27  ;;  %vm5291_vm11 = vnez %v5290_v6 }
 0x167   : > { %2403 = vmatprep.subr.msk.bf16.mxu1 %vm5282_vm9, %v5046_v27  ;;  %vm5293_vm9 = vnez %v5292_v9 }
 0x168   : > { %2333 = vmatpush2.bf16.msk.msra.mxu0 %vm5284_vm12, %v5046_v27  ;;  %vm5294_vm12 = vnez %v5125_v59  ;;  %v2569_v59 = vld [vmem:[%s4776_s2] ss:$12 sps:$4 sm:$0xff]  }
 0x169   : > { %2335 = vmatprep.subr.msk.bf16.mxu0 %vm5286_vm2, %v5046_v27  ;;  %vm5295_vm2 = vnez %v5127_v26  ;;  %v2572_v26 = vld [vmem:[%s4776_s2 + $0x1c] ss:$12 sps:$4 sm:$0xff]  }
 0x16a   : > { %2405 = vmatpush1.bf16.msk.msra.mxu1 %vm5287_vm1, %v5046_v27  ;;  %vm5297_vm1 = vnez %v5296_v32 }
 0x16b   : > { %2407 = vmatprep.subr.msk.bf16.mxu1 %vm5289_vm0, %v5046_v27  ;;  %vm5300_vm0 = vnez %v5299_v15  ;;  %v1703_v15 = vld [vmem:[%s2796_s17 + $0x28] sm:$0xff] }
 0x16c   : > { %2337 = vmatpush2.bf16.msk.msra.mxu0 %vm5291_vm11, %v5046_v27  ;;  %vm5301_vm11 = vnez %v5151_v42 }
 0x16d   : > { %2339 = vmatprep.subr.msk.bf16.mxu0 %vm5293_vm9, %v5046_v27  ;;  %vm5305_vm9 = vnez %v5153_v3  ;;  %v2574_v3 = vld [vmem:[%s4776_s2 + $0x18] ss:$12 sps:$4 sm:$0xff]  }
 0x16e   : > { %2409 = vmatpush1.bf16.msk.msra.mxu1 %vm5294_vm12, %v5046_v27  ;;  %vm5306_vm12 = vnez %v4941_v2 }
 0x16f   : > { %2411 = vmatprep.subr.msk.bf16.mxu1 %vm5295_vm2, %v5046_v27  ;;  %vm5307_vm2 = vnez %v4951_v13 }
 0x170   : > { %2341 = vmatpush2.bf16.msk.msra.mxu0 %vm5297_vm1, %v5046_v27  ;;  %vm5308_vm1 = vnez %v5165_v40 }
 0x171   : > { %2343 = vmatprep.subr.msk.bf16.mxu0 %vm4058_vm13, %v5046_v27  ;;  %vm5303_vm13 = vnez %v5302_v39 }
 0x172   : > { %2413 = vmatpush2.bf16.msk.msra.mxu1 %vm4017_vm3, %v5046_v27  ;;  %vm5304_vm3 = vnez %v5147_v28 }
 0x173   : > { %2415 = vmatprep.subr.msk.bf16.mxu1 %vm5300_vm0, %v5046_v27  ;;  %vm5309_vm0 = vnez %v5167_v4 }
 0x174   : > { %2345 = vmatpush2.bf16.msk.msra.mxu0 %vm5301_vm11, %v5046_v27  ;;  %vm5310_vm11 = vnez %v4953_v14 }
 0x175   : > { %2443 = vmatprep.subr.msk.bf16.mxu0 %vm5303_vm13, %v5046_v27  ;;  %vm5311_vm13 = vnez %v4963_v23 }
 0x176   : > { %2417 = vmatpush2.bf16.msk.msra.mxu1 %vm5304_vm3, %v5046_v27  ;;  %vm5312_vm3 = vnez %v5171_v18 }
 0x177   : > { %1519 = vmatmul.mubr.bf16.vlgmr.msra.gmra.mxu0 %v2569_v59  ;;  %2419 = vmatprep.subr.msk.bf16.mxu1 %vm5305_vm9, %v5046_v27  ;;  %vm5313_vm9 = vnez %v5173_v53 }
 0x178   : > { %2445 = vmatpush1.bf16.msk.msra.mxu0 %vm5306_vm12, %v5046_v27  ;;  %1528 = vmatprep.mubr.bf16.mxu0 %v2572_v26  ;;  %vm5314_vm12 = vnez %v4965_v24 }
 0x179   : > { %2447 = vmatprep.subr.msk.bf16.mxu0 %vm5307_vm2, %v5046_v27  ;;  %vm5315_vm2 = vnez %v4978_v33 }
 0x17a   : > { %2421 = vmatpush2.bf16.msk.msra.mxu1 %vm5308_vm1, %v5046_v27  ;;  %vm5316_vm1 = vnez %v5177_v63 }
 0x17b   : > { %2423 = vmatprep.subr.msk.bf16.mxu1 %vm5309_vm0, %v5046_v27  ;;  %vm5317_vm0 = vnez %v5179_v0 }
 0x17c   : > { %2449 = vmatpush1.bf16.msk.msra.mxu0 %vm5310_vm11, %v5046_v27  ;;  %vm5318_vm11 = vnez %v4980_v34 }
 0x17d   : > { %2451 = vmatprep.subr.msk.bf16.mxu0 %vm5311_vm13, %v5046_v27  ;;  %vm5319_vm13 = vnez %v4998_v7 }
 0x17e   : > { %2425 = vmatpush2.bf16.msk.msra.mxu1 %vm5312_vm3, %v5046_v27  ;;  %vm5320_vm3 = vnez %v5183_v11 }
 0x17f   : > { %1529 = vmatmul.mubr.bf16.gmra.mxu0 %v2574_v3  ;;  %2427 = vmatprep.subr.msk.bf16.mxu1 %vm5313_vm9, %v5046_v27  ;;  %vm5321_vm9 = vnez %v5185_v37 }
 0x180   : > { %2453 = vmatpush1.bf16.msk.msra.mxu0 %vm5314_vm12, %v5046_v27  ;;  %1677 = vmatprep.mubr.bf16.mxu0 %v5045_v45 }
 0x181   : > { %2455 = vmatprep.subr.msk.bf16.mxu0 %vm5315_vm2, %v5046_v27 }
 0x182   : > { %2429 = vmatpush2.bf16.msk.msra.mxu1 %vm5316_vm1, %v5046_v27 }
 0x183   : > { %2431 = vmatprep.subr.msk.bf16.mxu1 %vm5317_vm0, %v5046_v27 }
 0x184   : > { %2457 = vmatpush1.bf16.msk.msra.mxu0 %vm5318_vm11, %v5046_v27 }
 0x185   : > { %2459 = vmatprep.subr.msk.bf16.mxu0 %vm5319_vm13, %v5046_v27 }
 0x186   : > { %2433 = vmatpush2.bf16.msk.msra.mxu1 %vm5320_vm3, %v5046_v27 }
 0x187   : > { %2435 = vmatprep.subr.msk.bf16.mxu1 %vm5321_vm9, %v5046_v27 }
 0x188   : > { %2461 = vmatpush1.bf16.msk.msra.mxu0 %vm5186_vm15, %v5046_v27  ;;  %vm5322_vm15 = vnez %v5158_v1 }
 0x189   : > { %2463 = vmatprep.subr.msk.bf16.mxu0 %vm5187_vm7, %v5046_v27 }
 0x18a   : > { %2437 = vmatpush2.bf16.msk.msra.mxu1 %vm4265_vm8, %v5046_v27 }
 0x18b   : > { %2439 = vmatprep.subr.msk.bf16.mxu1 %vm4276_vm5, %v5046_v27  ;;  %vm5323_vm5 = vnez %v5161_v38 }
 0x18c   : > { %2465 = vmatpush1.bf16.msk.msra.mxu0 %vm5192_vm10, %v5046_v27 }
 0x18d   : > { %2467 = vmatprep.subr.msk.bf16.mxu0 %vm4042_vm6, %v5046_v27 }
 0x18e   : > { %2441 = vmatpush2.bf16.msk.msra.mxu1 %vm4286_vm4, %v5046_v27 }
 0x190   : > { %2469 = vmatpush1.bf16.msk.msra.mxu0 %vm4112_vm14, %v5046_v27 }
 0x191   : > { %2471 = vmatprep.subr.msk.bf16.mxu0 %vm5322_vm15, %v5046_v27  ;;  %1625 = vmatmul.mubr.bf16.vlgmr.msra.gmra.mxu1 %v2569_v59 }
 0x192   : > { %1634 = vmatprep.mubr.bf16.mxu1 %v2572_v26 }
 0x194   : > { %2473 = vmatpush1.bf16.msk.msra.mxu0 %vm5323_vm5, %v5046_v27 }
 0x197   : > { %1678 = vmatmul.mubr.bf16.vlgmr.msra.gmra.mxu0 %v4401_v62 }
 0x198   : > { %1687 = vmatprep.mubr.bf16.mxu0 %v5045_v45 }
 0x199   : > { %1635 = vmatmul.mubr.bf16.gmra.mxu1 %v2574_v3 }
 0x19f   : > { %1688 = vmatmul.mubr.bf16.gmra.mxu0 %v4432_v29 }
 0x1b0   : > { %v1329_v2 = vpop.f32.mrf.mxu1 }
 0x1b2   : > { %v1331_v13 = vpop.f32.mrf.mxu1 }
 0x1b4   : > { %v1333_v14 = vpop.f32.mrf.mxu1 }
 0x1b6   : > { %v1335_v23 = vpop.f32.mrf.mxu1 }
 0x1b8   : > { %v1339_v1 = vpop.f32.mrf.mxu1 }
 0x1ba   : > { %v1341_v34 = vpop.f32.mrf.mxu1 }
 0x1bc   : > { %v1343_v8 = vpop.f32.mrf.mxu1 }
 0x1be   : > { %v4628_v27 = vpop.f32.mrf.mxu1 }
 0x1d7   : > { %v1276_v24 = vpop.f32.mrf.mxu0 }
 0x1d8   : > { %v1330_v48 = vadd.f32 %v1329_v2, %v1276_v24 }
 0x1d9   : > { %v1278_v33 = vpop.f32.mrf.mxu0 }
 0x1da   : > { %v1332_v49 = vadd.f32 %v1331_v13, %v1278_v33 }
 0x1db   : > { %v1280_v7 = vpop.f32.mrf.mxu0 }
 0x1dc   : > { %v1334_v46 = vadd.f32 %v1333_v14, %v1280_v7  ;;  %v1706_v14 = vld [vmem:[%s2796_s17 + $0x40] sm:$0xff] }
 0x1dd   : > { %v1282_v17 = vpop.f32.mrf.mxu0 }
 0x1de   : > { %v1336_v51 = vadd.f32 %v1335_v23, %v1282_v17 }
 0x1df   : > { %v1286_v43 = vpop.f32.mrf.mxu0 }
 0x1e0   : > { %v1340_v6 = vadd.f32 %v1339_v1, %v1286_v43  ;;  %v1707_v43 = vld [vmem:[%s2796_s17 + $0x48] sm:$0xff] }
 0x1e1   : > { %v1288_v45 = vpop.f32.mrf.mxu0 }
 0x1e2   : > { %v1342_v26 = vadd.f32 %v1341_v34, %v1288_v45 }
 0x1e3   : > { %v1290_v42 = vpop.f32.mrf.mxu0 }
 0x1e4   : > { %v1344_v24 = vadd.f32 %v1343_v8, %v1290_v42 }
 0x1e5   : > { %v1292_v38 = vpop.f32.mrf.mxu0 }
 0x1e6   : > { %v1346_v34 = vadd.f32 %v4628_v27, %v1292_v38 }
 0x1f0   : > { %v4630_v60 = vpop.f32.mrf.mxu1 }
 0x1f2   : > { %v4632_v28 = vpop.f32.mrf.mxu1 }
 0x1f4   : > { %v4634_v36 = vpop.f32.mrf.mxu1 }
 0x1f6   : > { %v4638_v4 = vpop.f32.mrf.mxu1 }
 0x1f7   : > { %v4636_v40 = vpop.f32.mrf.mxu0 }
 0x1f9   : > { %v4640_v18 = vpop.f32.mrf.mxu1  ;;  %v4642_v53 = vpop.f32.mrf.mxu0 }
 0x1fb   : > { %v4644_v63 = vpop.f32.mrf.mxu1  ;;  %v4646_v0 = vpop.f32.mrf.mxu0 }
 0x1fd   : > { %v4648_v11 = vpop.f32.mrf.mxu1  ;;  %v4650_v37 = vpop.f32.mrf.mxu0 }
 0x1ff   : > { %v4652_v21 = vpop.f32.mrf.mxu0  ;;  %v4654_v57 = vpop.f32.mrf.mxu1 }
 0x201   : > { %v4656_v62 = vpop.f32.mrf.mxu0 }
 0x203   : > { %v4658_v19 = vpop.f32.mrf.mxu0 }
 0x205   : > { %v4660_v29 = vpop.f32.mrf.mxu0 }
 0x211   : > { %v1573_v22 = vpop.f32.mrf.mxu1 }
 0x213   : > { %v1575_v16 = vpop.f32.mrf.mxu1 }
 0x215   : > { %v1577_v20 = vpop.f32.mrf.mxu1 }
 0x217   : > { %v1579_v41 = vpop.f32.mrf.mxu1 }
 0x219   : > { %v1583_v25 = vpop.f32.mrf.mxu1 }
 0x21b   : > { %v1585_v5 = vpop.f32.mrf.mxu1 }
 0x21d   : > { %v1587_v23 = vpop.f32.mrf.mxu1 }
 0x237   : > { %v1520_v31 = vpop.f32.mrf.mxu0 }
 0x238   : > { %v1521_v35 = vadd.f32 %v1520_v31, %v1330_v48  ;;  %v1710_v48 = vld [vmem:[%s2796_s17 + $0x60] sm:$0xff] }
 0x239   : > { %v1522_v54 = vpop.f32.mrf.mxu0 }
 0x23a   : > { %v1574_v44 = vadd.f32 %v1573_v22, %v1521_v35  ;;  %v1523_v47 = vadd.f32 %v1522_v54, %v1332_v49  ;;  %v1711_v49 = vld [vmem:[%s2796_s17 + $0x68] sm:$0xff] }
 0x23b   : > { %v1524_v12 = vpop.f32.mrf.mxu0 }
 0x23c   : > { %v1714_v52 = vadd.f32 %v1698_v30, %v1574_v44  ;;  %v1576_v55 = vadd.f32 %v1575_v16, %v1523_v47  ;;  %v1525_v56 = vadd.f32 %v1524_v12, %v1334_v46  ;;  %v1438_v44 = vadd.f32 %v4642_v53, %v4632_v28  ;;  %v1700_v12 = vld [vmem:[%s2796_s17 + $0x10] sm:$0xff] }
 0x23d   : > { %v1526_v61 = vpop.f32.mrf.mxu0 }
 0x23e   : > { %1730 = vst [vmem:[%s2796_s17] sm:$0xff] %v1714_v52  ;;  %v1715_v9 = vadd.f32 %v1699_v50, %v1576_v55  ;;  %v1578_v32 = vadd.f32 %v1577_v20, %v1525_v56  ;;  %v1527_v10 = vadd.f32 %v1526_v61, %v1336_v51  ;;  %v1440_v52 = vadd.f32 %v4646_v0, %v4634_v36  ;;  %v1701_v61 = vld [vmem:[%s2796_s17 + $0x18] sm:$0xff] }
 0x23f   : > { %v1530_v59 = vpop.f32.mrf.mxu0  ;;  %v1446_v36 = vadd.f32 %v4652_v21, %v4640_v18  ;;  %v1708_v18 = vld [vmem:[%s2796_s17 + $0x50] sm:$0xff]  ;;  %v1450_v21 = vadd.f32 %v4658_v19, %v4648_v11 }
 0x240   : > { %1731 = vst [vmem:[%s2796_s17 + $0x8] sm:$0xff] %v1715_v9  ;;  %v1718_v39 = vadd.f32 %v1702_v58, %v1578_v32  ;;  %v1580_v3 = vadd.f32 %v1579_v41, %v1527_v10  ;;  %v1531_v2 = vadd.f32 %v1530_v59, %v1340_v6  ;;  %v1589_v41 = vpop.f32.mrf.mxu1  ;;  %v1704_v9 = vld [vmem:[%s2796_s17 + $0x30] sm:$0xff] }
 0x241   : > { %v1532_v13 = vpop.f32.mrf.mxu0  ;;  %v1712_v11 = vld [vmem:[%s2796_s17 + $0x70] sm:$0xff] }
 0x242   : > { %1734 = vst [vmem:[%s2796_s17 + $0x20] sm:$0xff] %v1718_v39  ;;  %v1719_v1 = vadd.f32 %v1703_v15, %v1580_v3  ;;  %v1533_v33 = vadd.f32 %v1532_v13, %v1342_v26  ;;  %v1584_v7 = vadd.f32 %v1583_v25, %v1531_v2  ;;  %v1436_v25 = vadd.f32 %v4636_v40, %v4630_v60  ;;  %v1705_v26 = vld [vmem:[%s2796_s17 + $0x38] sm:$0xff] }
 0x243   : > { %v1534_v17 = vpop.f32.mrf.mxu0  ;;  %v1442_v60 = vadd.f32 %v4650_v37, %v4638_v4  ;;  %v1448_v37 = vadd.f32 %v4656_v62, %v4644_v63  ;;  %v1709_v62 = vld [vmem:[%s2796_s17 + $0x58] sm:$0xff] }
 0x244   : > { %1735 = vst [vmem:[%s2796_s17 + $0x28] sm:$0xff] %v1719_v1  ;;  %v1722_v45 = vadd.f32 %v1706_v14, %v1584_v7  ;;  %v1535_v22 = vadd.f32 %v1534_v17, %v1344_v24  ;;  %v1586_v16 = vadd.f32 %v1585_v5, %v1533_v33  ;;  %v1452_v33 = vadd.f32 %v4660_v29, %v4654_v57 }
 0x245   : > { %v1536_v20 = vpop.f32.mrf.mxu0 }
 0x246   : > { %1738 = vst [vmem:[%s2796_s17 + $0x40] sm:$0xff] %v1722_v45  ;;  %v1723_v8 = vadd.f32 %v1707_v43, %v1586_v16  ;;  %v1537_v42 = vadd.f32 %v1536_v20, %v1346_v34  ;;  %v1588_v31 = vadd.f32 %v1587_v23, %v1535_v22  ;;  %v1713_v20 = vld [vmem:[%s2796_s17 + $0x78] sm:$0xff] }
 0x248   : > { %1739 = vst [vmem:[%s2796_s17 + $0x48] sm:$0xff] %v1723_v8  ;;  %v1726_v35 = vadd.f32 %v1710_v48, %v1588_v31  ;;  %v1590_v30 = vadd.f32 %v1589_v41, %v1537_v42 }
 0x24a   : > { %1742 = vst [vmem:[%s2796_s17 + $0x60] sm:$0xff] %v1726_v35  ;;  %v1727_v27 = vadd.f32 %v1711_v49, %v1590_v30 }
 0x24c   : > { %1743 = vst [vmem:[%s2796_s17 + $0x68] sm:$0xff] %v1727_v27 }
 0x251   : > { %v1626_v38 = vpop.f32.mrf.mxu1 }
 0x252   : > { %v1627_v47 = vadd.f32 %v1626_v38, %v1436_v25 }
 0x253   : > { %v1628_v54 = vpop.f32.mrf.mxu1 }
 0x254   : > { %v1629_v55 = vadd.f32 %v1628_v54, %v1438_v44 }
 0x255   : > { %v1630_v46 = vpop.f32.mrf.mxu1 }
 0x256   : > { %v1631_v28 = vadd.f32 %v1630_v46, %v1440_v52 }
 0x257   : > { %v1679_v50 = vpop.f32.mrf.mxu0  ;;  %v1632_v51 = vpop.f32.mrf.mxu1 }
 0x258   : > { %v1680_v56 = vadd.f32 %v1679_v50, %v1627_v47  ;;  %v1633_v0 = vadd.f32 %v1632_v51, %v1442_v60 }
 0x259   : > { %v1681_v58 = vpop.f32.mrf.mxu0  ;;  %v1636_v5 = vpop.f32.mrf.mxu1 }
 0x25a   : > { %v1716_v40 = vadd.f32 %v1700_v12, %v1680_v56  ;;  %v1682_v53 = vadd.f32 %v1681_v58, %v1629_v55  ;;  %v1637_v39 = vadd.f32 %v1636_v5, %v1446_v36 }
 0x25b   : > { %v1683_v6 = vpop.f32.mrf.mxu0  ;;  %v1638_v32 = vpop.f32.mrf.mxu1 }
 0x25c   : > { %1732 = vst [vmem:[%s2796_s17 + $0x10] sm:$0xff] %v1716_v40  ;;  %v1717_v10 = vadd.f32 %v1701_v61, %v1682_v53  ;;  %v1684_v15 = vadd.f32 %v1683_v6, %v1631_v28  ;;  %v1639_v14 = vadd.f32 %v1638_v32, %v1448_v37 }
 0x25d   : > { %v1685_v59 = vpop.f32.mrf.mxu0  ;;  %v1640_v4 = vpop.f32.mrf.mxu1 }
 0x25e   : > { %1733 = vst [vmem:[%s2796_s17 + $0x18] sm:$0xff] %v1717_v10  ;;  %v1720_v3 = vadd.f32 %v1704_v9, %v1684_v15  ;;  %v1686_v2 = vadd.f32 %v1685_v59, %v1633_v0  ;;  %v1641_v7 = vadd.f32 %v1640_v4, %v1450_v21 }
 0x25f   : > { %v1689_v13 = vpop.f32.mrf.mxu0  ;;  %v1642_v1 = vpop.f32.mrf.mxu1 }
 0x260   : > { %1736 = vst [vmem:[%s2796_s17 + $0x30] sm:$0xff] %v1720_v3  ;;  %v1721_v23 = vadd.f32 %v1705_v26, %v1686_v2  ;;  %v1690_v24 = vadd.f32 %v1689_v13, %v1637_v39  ;;  %v1643_v19 = vadd.f32 %v1642_v1, %v1452_v33 }
 0x261   : > { %v1691_v63 = vpop.f32.mrf.mxu0 }
 0x262   : > { %1737 = vst [vmem:[%s2796_s17 + $0x38] sm:$0xff] %v1721_v23  ;;  %v1724_v17 = vadd.f32 %v1708_v18, %v1690_v24  ;;  %v1692_v43 = vadd.f32 %v1691_v63, %v1639_v14 }
 0x263   : > { %v1693_v34 = vpop.f32.mrf.mxu0 }
 0x264   : > { %1740 = vst [vmem:[%s2796_s17 + $0x50] sm:$0xff] %v1724_v17  ;;  %v1725_v45 = vadd.f32 %v1709_v62, %v1692_v43  ;;  %v1694_v22 = vadd.f32 %v1693_v34, %v1641_v7 }
 0x265   : > { %v1695_v16 = vpop.f32.mrf.mxu0 }
 0x266   : > { %1741 = vst [vmem:[%s2796_s17 + $0x58] sm:$0xff] %v1725_v45  ;;  %v1728_v48 = vadd.f32 %v1712_v11, %v1694_v22  ;;  %v1696_v41 = vadd.f32 %v1695_v16, %v1643_v19 }
 0x268   : > { %1744 = vst [vmem:[%s2796_s17 + $0x70] sm:$0xff] %v1728_v48  ;;  %v1729_v8 = vadd.f32 %v1713_v20, %v1696_v41 }
 0x26a   : > { %1745 = vst [vmem:[%s2796_s17 + $0x78] sm:$0xff] %v1729_v8 }
 0x26b PF: > { %s2475_s28 = sshll.u32 %s2670_s23, 2  ;;  %s2476_s5 = sshll.u32 %s2666_s22, 5 }
 0x26c   : > { %s1762_s8 = sshll.u32 %s2796_s17, 4  ;;  %s1759_s9 = sadd.s32 %s2476_s5, %s2475_s28  ;;  %s4714_s8 = int_to_ptr.vmem [resolvable:$true] %s1762_s8 }
 0x26d   : > { %s2477_s10 = sshll.u32 %s1759_s9, 7  ;;  %s4723_s16 = scalar_lea.sflag [#allocation5], %s222_s12 }
 0x26e   : > { %s4719_s15 = scalar_lea.hbm %s4778_s4, %s2477_s10  ;;  %s2588_s18 = scalar_lea.vmem %s4714_s8, 2048 }
 0x26f   : > { %p2589_p4 = scmp.ne.s32.totalorder %s4714_s8, %s2588_s18  ;;  %s2688_s22 = smov [#allocation4]  }
 0x270   : > { %s2592_s23 = sshll.u32 %s2688_s22, 4  ;;  %s2593_s23 = int_to_ptr.vmem [resolvable:$false] %s2592_s23 }
 0x271   : > { %p2590_p5 = pnand %p2589_p4, %p2771_p8  ;;  %s2594_s17 = scalar_lea.vmem %s2593_s23, 4096 }
 0x272   : > { %p2595_p7 = scmp.lt.s32.totalorder %s4714_s8, %s2593_s23  ;;  %p2596_p9 = scmp.lt.s32.totalorder %s2594_s17, %s2588_s18 }
 0x273   : > { %p2591_p6 = pneg %p2590_p5 }
 0x274   : > { %p2597_p10 = por %p2596_p9, %p2595_p7 }
 0x276   : > { %p2598_p11 = pnand %p2597_p10, %p2591_p6 }
 0x278   : > { %2601 = shalt.err (!%p2598_p11)
}
 0x279   : > { %s2602_s12 = scalar_lea.hbm %s4719_s15, 2048  ;;  %s2606_s28 = scalar_lea.hbm %s4778_s4, 8192 }
 0x27a   : > { %p2603_p12 = scmp.ne.s32.totalorder %s4719_s15, %s2602_s12  ;;  %p2607_p2 = scmp.lt.s32.totalorder %s4719_s15, %s4778_s4 }
 0x27b   : > { %p2608_p3 = scmp.lt.s32.totalorder %s2606_s28, %s2602_s12 }
 0x27c   : > { %p2604_p0 = pnand %p2603_p12, %p2771_p8 }
 0x27d   : > { %p2609_p4 = por %p2608_p3, %p2607_p2 }
 0x27e   : > { %p2605_p1 = pneg %p2604_p0 }
 0x280   : > { %p2610_p5 = pnand %p2609_p4, %p2605_p1 }
 0x282   : > { %2613 = shalt.err (!%p2610_p5)
}
 0x283   : > { %s2689_s10 = smov 512   ;;  %s2690_s13 = smov 1024  }
 0x284   : > { %s2691_s14 = smov 32  }
 0x285   : > { %2480 = dma.vmem_to_hbm [thread:$0]  (%p2771_p8), %s4714_s8, 2048, %s4719_s15, %s4723_s16, %s2689_s10, %s2690_s13, %s2691_s14  }
 0x286 PF: > { %p2486_p6 = scmp.ge.s32.totalorder %s2682_s26, 2  ;;  %s1777_s18 = sand.u32 1, %s2654_s20  }
 0x287   : > { %s1778_s22 = scalar_lea.sflag [#allocation5], %s1777_s18 }
 0x288   : > { %p2483_p7 = pnand %p2486_p6, %p2780_p13 }
 0x28a   : > { %p2484_p9 = pneg %p2483_p7 }
 0x28c   : > { %2649 = dma.done.wait (%p2484_p9), %s1778_s22, 2048  }
 0x28d   : > { %2651 = vsyncadd (%p2484_p9), %s1778_s22, 4294965248  ;;  %s23_s26 = sadd.s32 1, %s2682_s26   ;;  %s5324_s20 = smov %s2658_s21 }
 0x28e   : > { %p20_p10 = scmp.ge.s32.totalorder %s23_s26, 6   ;;  %s5325_s21 = smov %s2662_s0 }
 0x28f   : > { %s5326_s0 = smov %s2789_s11  ;;  %s5327_s22 = smov %s2674_s24 }
 0x290   : > { %s5328_s23 = smov %s2678_s25  ;;  %s5329_s24 = smov %s5332_s29 }
 0x291   : > { %s5330_s25 = smov %s5336_s30  ;;  %22 = sbr.rel (!%p20_p10) target bundleno = 20 (0x14), region = 81 }
 0x296   :  { %1783 = vsyncpa [#allocation5], 1 }
 0x297   :  { %1785 = vsyncpa [#allocation5 + $0x1], 1 }

</bundles_post_ra>
